<compile_context>
chip_gen: v6e
topology: v6e:2x2x1
jax: 0.10.0
libtpu: 0.0.40
codegen_flags: <defaults>
</compile_context>

<pallas_src>
import functools

import jax
import jax.numpy as jnp
from jax.experimental import pallas as pl
from jax.experimental.pallas import tpu as pltpu

BN_EPS = 1e-5


# ----------------------------------------------------------------------------
# Pallas kernels (one fused kernel per conv layer)
# ----------------------------------------------------------------------------
def _conv_bn_sigmoid_kernel(w_ref, x_ref, b_ref, g_ref, bt_ref, o_ref, *, eps):
    """sigmoid(BN(W @ X + b)) with BN batch statistics computed in-kernel.

    W: (Cout, K) bf16, X: (K, M) bf16, b/g/bt: (Cout, 1) f32, out: (Cout, M) f32.
    BN uses training-mode (per-batch, biased-variance) statistics, matching a
    freshly constructed nn.BatchNorm2d in train mode.
    """
    acc = jnp.dot(w_ref[...], x_ref[...], preferred_element_type=jnp.float32)
    acc = acc + b_ref[...]
    mean = jnp.mean(acc, axis=1, keepdims=True)
    var = jnp.mean((acc - mean) ** 2, axis=1, keepdims=True)
    scale = g_ref[...] * jax.lax.rsqrt(var + eps)
    y = (acc - mean) * scale + bt_ref[...]
    o_ref[...] = 1.0 / (1.0 + jnp.exp(-y))


def _conv_relu_kernel(w_ref, x_ref, b_ref, o_ref):
    acc = jnp.dot(w_ref[...], x_ref[...], preferred_element_type=jnp.float32)
    o_ref[...] = jnp.maximum(acc + b_ref[...], 0.0)


def _conv_add_relu_kernel(w_ref, x_ref, b_ref, s_ref, o_ref):
    acc = jnp.dot(w_ref[...], x_ref[...], preferred_element_type=jnp.float32)
    o_ref[...] = jnp.maximum(acc + b_ref[...] + s_ref[...], 0.0)


def _full_spec(shape):
    # block == full array -> exempt from the (8,128) divisibility rule
    return pl.BlockSpec(shape, lambda i: (0,) * len(shape))


def _fused_conv_gemm(wm, xm, bias, *, epilogue, gamma=None, beta=None, skip=None):
    """(Cout, K) @ (K, M) + fused epilogue, single grid step."""
    Cout, K = wm.shape
    _, M = xm.shape

    def col(v):
        return v.reshape(Cout, 1).astype(jnp.float32)

    if epilogue == "bn_sigmoid":
        kernel = functools.partial(_conv_bn_sigmoid_kernel, eps=BN_EPS)
        args = [wm, xm, col(bias), col(gamma), col(beta)]
    elif epilogue == "relu":
        kernel = _conv_relu_kernel
        args = [wm, xm, col(bias)]
    elif epilogue == "add_relu":
        kernel = _conv_add_relu_kernel
        args = [wm, xm, col(bias), skip.astype(jnp.float32)]
    else:
        raise ValueError(epilogue)

    return pl.pallas_call(
        kernel,
        out_shape=jax.ShapeDtypeStruct((Cout, M), jnp.float32),
        grid=(1,),
        in_specs=[_full_spec(a.shape) for a in args],
        out_specs=_full_spec((Cout, M)),
        compiler_params=pltpu.CompilerParams(dimension_semantics=("arbitrary",)),
    )(*args)


# ----------------------------------------------------------------------------
# Conv / ConvTranspose built on the fused GEMM kernel (CNHW layout)
# ----------------------------------------------------------------------------
def _im2col_cnhw(x, kh, kw, stride, padding, circular):
    """x: (C, N, H, W) -> patch matrix (KH*KW*C, N*OH*OW) in bf16 (feature-major)."""
    C, N, H, W = x.shape
    x = x.astype(jnp.bfloat16)
    if padding > 0:
        mode = "wrap" if circular else "constant"
        x = jnp.pad(x, ((0, 0), (0, 0), (padding, padding), (padding, padding)),
                    mode=mode)
    OH = (H + 2 * padding - kh) // stride + 1
    OW = (W + 2 * padding - kw) // stride + 1
    taps = []
    for i in range(kh):
        for j in range(kw):
            taps.append(x[:, :, i:i + stride * (OH - 1) + 1:stride,
                             j:j + stride * (OW - 1) + 1:stride])
    xm = jnp.stack(taps, axis=0).reshape(kh * kw * C, N * OH * OW)  # contiguous
    return xm, OH, OW


def conv2d(x, w_oihw, bias, stride, padding, circular=False,
           epilogue="bn_sigmoid", gamma=None, beta=None, skip=None):
    """PyTorch-semantics Conv2d on a CNHW tensor, fused epilogue in one kernel."""
    C, N, H, W = x.shape
    Cout, Cin, KH, KW = w_oihw.shape
    xm, OH, OW = _im2col_cnhw(x, KH, KW, stride, padding, circular)
    # feature order of xm is (ki, kj, c)  ->  transpose weight to match
    wm = jnp.transpose(w_oihw, (0, 2, 3, 1)).reshape(Cout, KH * KW * Cin)
    wm = wm.astype(jnp.bfloat16)
    # keep the contraction axis sublane-aligned (only matters for the first conv)
    K = KH * KW * Cin
    Kp = ((K + 7) // 8) * 8
    if Kp != K:
        xm = jnp.pad(xm, ((0, Kp - K), (0, 0)))
        wm = jnp.pad(wm, ((0, 0), (0, Kp - K)))
    if skip is not None:
        skip = skip.reshape(Cout, -1)
    y = _fused_conv_gemm(wm, xm, bias, epilogue=epilogue,
                         gamma=gamma, beta=beta, skip=skip)
    return y.reshape(Cout, N, OH, OW)


def conv_transpose2d(x, w_iohw, bias, stride, padding, output_padding,
                     gamma, beta):
    """PyTorch-semantics ConvTranspose2d + BatchNorm + Sigmoid (fused) on CNHW."""
    Cin, Cout, KH, KW = w_iohw.shape
    C, N, H, W = x.shape
    # zero-dilate the input by stride
    Hd, Wd = (H - 1) * stride + 1, (W - 1) * stride + 1
    xd = jnp.zeros((C, N, Hd, Wd), x.dtype)
    xd = xd.at[:, :, ::stride, ::stride].set(x)
    # pad, with output_padding added on bottom/right
    ph, pw = KH - 1 - padding, KW - 1 - padding
    xd = jnp.pad(xd, ((0, 0), (0, 0), (ph, ph + output_padding),
                      (pw, pw + output_padding)))
    # equivalent forward-conv weight: flip spatially, swap in/out channels
    w_eq = jnp.transpose(w_iohw[:, :, ::-1, ::-1], (1, 0, 2, 3))
    return conv2d(xd, w_eq, bias, stride=1, padding=0, circular=False,
                  epilogue="bn_sigmoid", gamma=gamma, beta=beta)


def weight_norm_weight(v, g):
    """torch.nn.utils.weight_norm (dim=0): w = g * v / ||v||_{per out-channel}."""
    norm = jnp.sqrt(jnp.sum(v * v, axis=(1, 2, 3), keepdims=True))
    return v * (g.reshape(-1, 1, 1, 1) / norm)


# ----------------------------------------------------------------------------
# U_net configuration (effective_step=None branch of the PyTorch __init__)
# ----------------------------------------------------------------------------
INPUT_CHANNELS = 1
HIDDEN_CHANNELS = [8, 8]
KERNEL_SIZE = [3, 3]
STRIDE = [2, 2]
PADDING = [1, 1]
NUM_LAYERS = [2, 1, 0]   # [encoder/decoder, residual, convlstm(unused)]
STEP = 1

IN_CH_LIST = [INPUT_CHANNELS + 1] + HIDDEN_CHANNELS           # [2, 8, 8]
DEC_IN_CH = IN_CH_LIST[::-1][:-1]                             # [8, 8]
DEC_HID_CH = IN_CH_LIST[::-1]                                 # [8, 8, 2]
NUM_ENC = NUM_LAYERS[0]
NUM_RES = NUM_LAYERS[1]


def init_params(key):
    keys = iter(jax.random.split(key, 256))

    def nrm(shape, s=0.1):
        return s * jax.random.normal(next(keys), shape, jnp.float32)

    params = {"encoder": [], "residual": [], "decoder": []}
    for i in range(NUM_ENC):
        cin, cout, k = IN_CH_LIST[i], HIDDEN_CHANNELS[i], KERNEL_SIZE[i]
        params["encoder"].append(dict(
            v=nrm((cout, cin, k, k)),
            g=1.0 + nrm((cout,)),
            bias=nrm((cout,), 0.05),
            gamma=1.0 + nrm((cout,)),
            beta=nrm((cout,), 0.05),
        ))
    for _ in range(NUM_RES):
        c = HIDDEN_CHANNELS[-1]
        params["residual"].append(dict(
            w1=nrm((c, c, 3, 3)), b1=nrm((c,), 0.05),
            w2=nrm((c, c, 3, 3)), b2=nrm((c,), 0.05),
        ))
    for i in range(NUM_ENC):
        cin, cout, k = DEC_IN_CH[i], DEC_HID_CH[i], KERNEL_SIZE[i]
        params["decoder"].append(dict(
            down_w=nrm((cin, cin * 2, 3, 3)), down_b=nrm((cin,), 0.05),
            down_gamma=1.0 + nrm((cin,)), down_beta=nrm((cin,), 0.05),
            up1_w=nrm((cin, cout, k, k)), up1_b=nrm((cout,), 0.05),
            up1_gamma=1.0 + nrm((cout,)), up1_beta=nrm((cout,), 0.05),
            up2_w=nrm((cin, cout, k, k)), up2_b=nrm((cout,), 0.05),
            up2_gamma=1.0 + nrm((cout,)), up2_beta=nrm((cout,), 0.05),
        ))
    return params


def u_net_forward(x_nchw, params):
    # public NCHW -> internal CNHW (channels on sublanes, N*H*W on lanes)
    x = jnp.transpose(x_nchw, (1, 0, 2, 3)).astype(jnp.float32)
    k = x  # x.clone()
    encoder_out = []
    outputs = []
    for _ in range(STEP):
        x = jnp.concatenate([x, k], axis=0)                  # torch.cat dim=1 (C)
        # ---- encoders: conv (weight_norm, circular pad) + BN + sigmoid ----
        for i in range(NUM_ENC):
            p = params["encoder"][i]
            w = weight_norm_weight(p["v"], p["g"])
            x = conv2d(x, w, p["bias"], STRIDE[i], PADDING[i], circular=True,
                       epilogue="bn_sigmoid", gamma=p["gamma"], beta=p["beta"])
            encoder_out.append(x)
        encoder_out = encoder_out[::-1]   # same in-place reverse as the PyTorch code
        # ---- residual blocks: relu(conv1) then relu(x + conv2) ----
        for p in params["residual"]:
            c1 = conv2d(x, p["w1"], p["b1"], 1, 1, epilogue="relu")
            x = conv2d(c1, p["w2"], p["b2"], 1, 1, epilogue="add_relu", skip=x)
        # ---- decoders ----
        for i in range(NUM_ENC):
            p = params["decoder"][i]
            e = encoder_out[i]
            xc = jnp.concatenate([e, x], axis=0)             # torch.cat((x, out))
            d = conv2d(xc, p["down_w"], p["down_b"], 1, 1,
                       epilogue="bn_sigmoid",
                       gamma=p["down_gamma"], beta=p["down_beta"])
            if d.shape[-1] % 5 != 0:   # PyTorch checks x.shape[-1] (width)
                x = conv_transpose2d(d, p["up1_w"], p["up1_b"],
                                     STRIDE[i], PADDING[i], output_padding=1,
                                     gamma=p["up1_gamma"], beta=p["up1_beta"])
            else:
                x = conv_transpose2d(d, p["up2_w"], p["up2_b"],
                                     STRIDE[i], PADDING[i], output_padding=0,
                                     gamma=p["up2_gamma"], beta=p["up2_beta"])
        outputs.append(x)
    out = jnp.concatenate(outputs, axis=0)
    return jnp.transpose(out, (1, 0, 2, 3))                  # CNHW -> NCHW


if __name__ == "__main__":
    key = jax.random.PRNGKey(0)
    x = jax.random.normal(key, (2, INPUT_CHANNELS, 16, 16), jnp.float32)
    params = init_params(jax.random.PRNGKey(42))
    fwd = jax.jit(u_net_forward)
    out = fwd(x, params)
    out = jax.block_until_ready(out)
    assert out.shape == (2, HIDDEN_CHANNELS[-1] * STEP, 16, 16), out.shape
    assert bool(jnp.all(jnp.isfinite(out)))
    print("KERNEL_OK")
</pallas_src>

<mosaic_0001>
module attributes {stable_mosaic.version = 11 : i64} {
  func.func @_conv_bn_sigmoid_kernel(%arg0: i32, %arg1: memref<8x24xbf16, #tpu.memory_space<vmem>>, %arg2: memref<24x128xbf16, #tpu.memory_space<vmem>>, %arg3: memref<8x1xf32, #tpu.memory_space<vmem>>, %arg4: memref<8x1xf32, #tpu.memory_space<vmem>>, %arg5: memref<8x1xf32, #tpu.memory_space<vmem>>, %arg6: memref<8x128xf32, #tpu.memory_space<vmem>>) attributes {dimension_semantics = [#tpu.dimension_semantics<arbitrary>], iteration_bounds = array<i64: 1>, scalar_prefetch = 0 : i64, scratch_operands = 0 : i64, tpu.core_type = #tpu.core_type<tc>, window_params = [{pipeline_mode = #tpu.pipeline_mode<synchronous>, transform_indices = @transform_0, window_bounds = array<i64: 8, 24>}, {pipeline_mode = #tpu.pipeline_mode<synchronous>, transform_indices = @transform_1, window_bounds = array<i64: 24, 128>}, {pipeline_mode = #tpu.pipeline_mode<synchronous>, transform_indices = @transform_2, window_bounds = array<i64: 8, 1>}, {pipeline_mode = #tpu.pipeline_mode<synchronous>, transform_indices = @transform_3, window_bounds = array<i64: 8, 1>}, {pipeline_mode = #tpu.pipeline_mode<synchronous>, transform_indices = @transform_4, window_bounds = array<i64: 8, 1>}, {pipeline_mode = #tpu.pipeline_mode<synchronous>, transform_indices = @transform_5, window_bounds = array<i64: 8, 128>}]} {
    %c0 = arith.constant 0 : index
    %c0_0 = arith.constant 0 : index
    %0 = vector.load %arg1[%c0, %c0_0] : memref<8x24xbf16, #tpu.memory_space<vmem>>, vector<8x24xbf16>
    %c0_1 = arith.constant 0 : index
    %c0_2 = arith.constant 0 : index
    %1 = vector.load %arg2[%c0_1, %c0_2] : memref<24x128xbf16, #tpu.memory_space<vmem>>, vector<24x128xbf16>
    %cst = arith.constant dense<0.000000e+00> : vector<8x128xf32>
    %2 = tpu.matmul %0, %1, %cst {dimension_numbers = #tpu.dot_dimension_numbers<[1], [0], [0], [1], [0, 0, 1, 1], [], []>} : vector<8x24xbf16>, vector<24x128xbf16>, vector<8x128xf32> -> vector<8x128xf32>
    %c0_3 = arith.constant 0 : index
    %c0_4 = arith.constant 0 : index
    %3 = vector.load %arg3[%c0_3, %c0_4] : memref<8x1xf32, #tpu.memory_space<vmem>>, vector<8x1xf32>
    %4 = vector.broadcast %3 : vector<8x1xf32> to vector<8x128xf32>
    %5 = arith.addf %2, %4 : vector<8x128xf32>
    %cst_5 = arith.constant dense<0.000000e+00> : vector<8xf32>
    %6 = vector.multi_reduction <add>, %5, %cst_5 [1] : vector<8x128xf32> to vector<8xf32>
    %7 = vector.shape_cast %6 : vector<8xf32> to vector<8x1xf32>
    %cst_6 = arith.constant 1.280000e+02 : f32
    %8 = vector.broadcast %cst_6 : f32 to vector<8x1xf32>
    %9 = arith.divf %7, %8 : vector<8x1xf32>
    %10 = vector.broadcast %9 : vector<8x1xf32> to vector<8x128xf32>
    %11 = arith.subf %5, %10 : vector<8x128xf32>
    %12 = arith.mulf %11, %11 : vector<8x128xf32>
    %cst_7 = arith.constant dense<0.000000e+00> : vector<8xf32>
    %13 = vector.multi_reduction <add>, %12, %cst_7 [1] : vector<8x128xf32> to vector<8xf32>
    %14 = vector.shape_cast %13 : vector<8xf32> to vector<8x1xf32>
    %cst_8 = arith.constant 1.280000e+02 : f32
    %15 = vector.broadcast %cst_8 : f32 to vector<8x1xf32>
    %16 = arith.divf %14, %15 : vector<8x1xf32>
    %c0_9 = arith.constant 0 : index
    %c0_10 = arith.constant 0 : index
    %17 = vector.load %arg4[%c0_9, %c0_10] : memref<8x1xf32, #tpu.memory_space<vmem>>, vector<8x1xf32>
    %cst_11 = arith.constant 9.99999974E-6 : f32
    %18 = vector.broadcast %cst_11 : f32 to vector<8x1xf32>
    %19 = arith.addf %16, %18 : vector<8x1xf32>
    %20 = math.rsqrt %19 : vector<8x1xf32>
    %21 = arith.mulf %17, %20 : vector<8x1xf32>
    %22 = vector.broadcast %9 : vector<8x1xf32> to vector<8x128xf32>
    %23 = arith.subf %5, %22 : vector<8x128xf32>
    %24 = vector.broadcast %21 : vector<8x1xf32> to vector<8x128xf32>
    %25 = arith.mulf %23, %24 : vector<8x128xf32>
    %c0_12 = arith.constant 0 : index
    %c0_13 = arith.constant 0 : index
    %26 = vector.load %arg5[%c0_12, %c0_13] : memref<8x1xf32, #tpu.memory_space<vmem>>, vector<8x1xf32>
    %27 = vector.broadcast %26 : vector<8x1xf32> to vector<8x128xf32>
    %28 = arith.addf %25, %27 : vector<8x128xf32>
    %cst_14 = arith.constant 0.000000e+00 : f32
    %29 = vector.broadcast %cst_14 : f32 to vector<8x128xf32>
    %30 = arith.subf %29, %28 : vector<8x128xf32>
    %31 = math.exp %30 : vector<8x128xf32>
    %cst_15 = arith.constant 1.000000e+00 : f32
    %32 = vector.broadcast %cst_15 : f32 to vector<8x128xf32>
    %33 = arith.addf %32, %31 : vector<8x128xf32>
    %cst_16 = arith.constant 1.000000e+00 : f32
    %34 = vector.broadcast %cst_16 : f32 to vector<8x128xf32>
    %35 = arith.divf %34, %33 : vector<8x128xf32>
    %c0_17 = arith.constant 0 : index
    %c0_18 = arith.constant 0 : index
    %36 = vector.load %arg6[%c0_17, %c0_18] : memref<8x128xf32, #tpu.memory_space<vmem>>, vector<8x128xf32>
    tpu.vector_store %arg6[%c0_17, %c0_18], %35 {strides = array<i32>} : memref<8x128xf32, #tpu.memory_space<vmem>>, vector<8x128xf32>,
    return
  }
  func.func @transform_0(%arg0: i32) -> (i32, i32) {
    %c0_i32 = arith.constant 0 : i32
    %c0_i32_0 = arith.constant 0 : i32
    %c0_i32_1 = arith.constant 0 : i32
    return %c0_i32, %c0_i32_0 : i32, i32
  }
  func.func @transform_1(%arg0: i32) -> (i32, i32) {
    %c0_i32 = arith.constant 0 : i32
    %c0_i32_0 = arith.constant 0 : i32
    %c0_i32_1 = arith.constant 0 : i32
    return %c0_i32, %c0_i32_0 : i32, i32
  }
  func.func @transform_2(%arg0: i32) -> (i32, i32) {
    %c0_i32 = arith.constant 0 : i32
    %c0_i32_0 = arith.constant 0 : i32
    %c0_i32_1 = arith.constant 0 : i32
    return %c0_i32, %c0_i32_0 : i32, i32
  }
  func.func @transform_3(%arg0: i32) -> (i32, i32) {
    %c0_i32 = arith.constant 0 : i32
    %c0_i32_0 = arith.constant 0 : i32
    %c0_i32_1 = arith.constant 0 : i32
    return %c0_i32, %c0_i32_0 : i32, i32
  }
  func.func @transform_4(%arg0: i32) -> (i32, i32) {
    %c0_i32 = arith.constant 0 : i32
    %c0_i32_0 = arith.constant 0 : i32
    %c0_i32_1 = arith.constant 0 : i32
    return %c0_i32, %c0_i32_0 : i32, i32
  }
  func.func @transform_5(%arg0: i32) -> (i32, i32) {
    %c0_i32 = arith.constant 0 : i32
    %c0_i32_0 = arith.constant 0 : i32
    %c0_i32_1 = arith.constant 0 : i32
    return %c0_i32, %c0_i32_0 : i32, i32
  }
}

module attributes {stable_mosaic.version = 11 : i64} {
  func.func @_conv_bn_sigmoid_kernel(%arg0: i32, %arg1: memref<8x72xbf16, #tpu.memory_space<vmem>>, %arg2: memref<72x32xbf16, #tpu.memory_space<vmem>>, %arg3: memref<8x1xf32, #tpu.memory_space<vmem>>, %arg4: memref<8x1xf32, #tpu.memory_space<vmem>>, %arg5: memref<8x1xf32, #tpu.memory_space<vmem>>, %arg6: memref<8x32xf32, #tpu.memory_space<vmem>>) attributes {dimension_semantics = [#tpu.dimension_semantics<arbitrary>], iteration_bounds = array<i64: 1>, scalar_prefetch = 0 : i64, scratch_operands = 0 : i64, tpu.core_type = #tpu.core_type<tc>, window_params = [{pipeline_mode = #tpu.pipeline_mode<synchronous>, transform_indices = @transform_0, window_bounds = array<i64: 8, 72>}, {pipeline_mode = #tpu.pipeline_mode<synchronous>, transform_indices = @transform_1, window_bounds = array<i64: 72, 32>}, {pipeline_mode = #tpu.pipeline_mode<synchronous>, transform_indices = @transform_2, window_bounds = array<i64: 8, 1>}, {pipeline_mode = #tpu.pipeline_mode<synchronous>, transform_indices = @transform_3, window_bounds = array<i64: 8, 1>}, {pipeline_mode = #tpu.pipeline_mode<synchronous>, transform_indices = @transform_4, window_bounds = array<i64: 8, 1>}, {pipeline_mode = #tpu.pipeline_mode<synchronous>, transform_indices = @transform_5, window_bounds = array<i64: 8, 32>}]} {
    %c0 = arith.constant 0 : index
    %c0_0 = arith.constant 0 : index
    %0 = vector.load %arg1[%c0, %c0_0] : memref<8x72xbf16, #tpu.memory_space<vmem>>, vector<8x72xbf16>
    %c0_1 = arith.constant 0 : index
    %c0_2 = arith.constant 0 : index
    %1 = vector.load %arg2[%c0_1, %c0_2] : memref<72x32xbf16, #tpu.memory_space<vmem>>, vector<72x32xbf16>
    %cst = arith.constant dense<0.000000e+00> : vector<8x32xf32>
    %2 = tpu.matmul %0, %1, %cst {dimension_numbers = #tpu.dot_dimension_numbers<[1], [0], [0], [1], [0, 0, 1, 1], [], []>} : vector<8x72xbf16>, vector<72x32xbf16>, vector<8x32xf32> -> vector<8x32xf32>
    %c0_3 = arith.constant 0 : index
    %c0_4 = arith.constant 0 : index
    %3 = vector.load %arg3[%c0_3, %c0_4] : memref<8x1xf32, #tpu.memory_space<vmem>>, vector<8x1xf32>
    %4 = vector.broadcast %3 : vector<8x1xf32> to vector<8x32xf32>
    %5 = arith.addf %2, %4 : vector<8x32xf32>
    %cst_5 = arith.constant dense<0.000000e+00> : vector<8xf32>
    %6 = vector.multi_reduction <add>, %5, %cst_5 [1] : vector<8x32xf32> to vector<8xf32>
    %7 = vector.shape_cast %6 : vector<8xf32> to vector<8x1xf32>
    %cst_6 = arith.constant 3.200000e+01 : f32
    %8 = vector.broadcast %cst_6 : f32 to vector<8x1xf32>
    %9 = arith.divf %7, %8 : vector<8x1xf32>
    %10 = vector.broadcast %9 : vector<8x1xf32> to vector<8x32xf32>
    %11 = arith.subf %5, %10 : vector<8x32xf32>
    %12 = arith.mulf %11, %11 : vector<8x32xf32>
    %cst_7 = arith.constant dense<0.000000e+00> : vector<8xf32>
    %13 = vector.multi_reduction <add>, %12, %cst_7 [1] : vector<8x32xf32> to vector<8xf32>
    %14 = vector.shape_cast %13 : vector<8xf32> to vector<8x1xf32>
    %cst_8 = arith.constant 3.200000e+01 : f32
    %15 = vector.broadcast %cst_8 : f32 to vector<8x1xf32>
    %16 = arith.divf %14, %15 : vector<8x1xf32>
    %c0_9 = arith.constant 0 : index
    %c0_10 = arith.constant 0 : index
    %17 = vector.load %arg4[%c0_9, %c0_10] : memref<8x1xf32, #tpu.memory_space<vmem>>, vector<8x1xf32>
    %cst_11 = arith.constant 9.99999974E-6 : f32
    %18 = vector.broadcast %cst_11 : f32 to vector<8x1xf32>
    %19 = arith.addf %16, %18 : vector<8x1xf32>
    %20 = math.rsqrt %19 : vector<8x1xf32>
    %21 = arith.mulf %17, %20 : vector<8x1xf32>
    %22 = vector.broadcast %9 : vector<8x1xf32> to vector<8x32xf32>
    %23 = arith.subf %5, %22 : vector<8x32xf32>
    %24 = vector.broadcast %21 : vector<8x1xf32> to vector<8x32xf32>
    %25 = arith.mulf %23, %24 : vector<8x32xf32>
    %c0_12 = arith.constant 0 : index
    %c0_13 = arith.constant 0 : index
    %26 = vector.load %arg5[%c0_12, %c0_13] : memref<8x1xf32, #tpu.memory_space<vmem>>, vector<8x1xf32>
    %27 = vector.broadcast %26 : vector<8x1xf32> to vector<8x32xf32>
    %28 = arith.addf %25, %27 : vector<8x32xf32>
    %cst_14 = arith.constant 0.000000e+00 : f32
    %29 = vector.broadcast %cst_14 : f32 to vector<8x32xf32>
    %30 = arith.subf %29, %28 : vector<8x32xf32>
    %31 = math.exp %30 : vector<8x32xf32>
    %cst_15 = arith.constant 1.000000e+00 : f32
    %32 = vector.broadcast %cst_15 : f32 to vector<8x32xf32>
    %33 = arith.addf %32, %31 : vector<8x32xf32>
    %cst_16 = arith.constant 1.000000e+00 : f32
    %34 = vector.broadcast %cst_16 : f32 to vector<8x32xf32>
    %35 = arith.divf %34, %33 : vector<8x32xf32>
    %c0_17 = arith.constant 0 : index
    %c0_18 = arith.constant 0 : index
    %36 = vector.load %arg6[%c0_17, %c0_18] : memref<8x32xf32, #tpu.memory_space<vmem>>, vector<8x32xf32>
    tpu.vector_store %arg6[%c0_17, %c0_18], %35 {strides = array<i32>} : memref<8x32xf32, #tpu.memory_space<vmem>>, vector<8x32xf32>,
    return
  }
  func.func @transform_0(%arg0: i32) -> (i32, i32) {
    %c0_i32 = arith.constant 0 : i32
    %c0_i32_0 = arith.constant 0 : i32
    %c0_i32_1 = arith.constant 0 : i32
    return %c0_i32, %c0_i32_0 : i32, i32
  }
  func.func @transform_1(%arg0: i32) -> (i32, i32) {
    %c0_i32 = arith.constant 0 : i32
    %c0_i32_0 = arith.constant 0 : i32
    %c0_i32_1 = arith.constant 0 : i32
    return %c0_i32, %c0_i32_0 : i32, i32
  }
  func.func @transform_2(%arg0: i32) -> (i32, i32) {
    %c0_i32 = arith.constant 0 : i32
    %c0_i32_0 = arith.constant 0 : i32
    %c0_i32_1 = arith.constant 0 : i32
    return %c0_i32, %c0_i32_0 : i32, i32
  }
  func.func @transform_3(%arg0: i32) -> (i32, i32) {
    %c0_i32 = arith.constant 0 : i32
    %c0_i32_0 = arith.constant 0 : i32
    %c0_i32_1 = arith.constant 0 : i32
    return %c0_i32, %c0_i32_0 : i32, i32
  }
  func.func @transform_4(%arg0: i32) -> (i32, i32) {
    %c0_i32 = arith.constant 0 : i32
    %c0_i32_0 = arith.constant 0 : i32
    %c0_i32_1 = arith.constant 0 : i32
    return %c0_i32, %c0_i32_0 : i32, i32
  }
  func.func @transform_5(%arg0: i32) -> (i32, i32) {
    %c0_i32 = arith.constant 0 : i32
    %c0_i32_0 = arith.constant 0 : i32
    %c0_i32_1 = arith.constant 0 : i32
    return %c0_i32, %c0_i32_0 : i32, i32
  }
}

module attributes {stable_mosaic.version = 11 : i64} {
  func.func @_conv_add_relu_kernel(%arg0: i32, %arg1: memref<8x72xbf16, #tpu.memory_space<vmem>>, %arg2: memref<72x32xbf16, #tpu.memory_space<vmem>>, %arg3: memref<8x1xf32, #tpu.memory_space<vmem>>, %arg4: memref<8x32xf32, #tpu.memory_space<vmem>>, %arg5: memref<8x32xf32, #tpu.memory_space<vmem>>) attributes {dimension_semantics = [#tpu.dimension_semantics<arbitrary>], iteration_bounds = array<i64: 1>, scalar_prefetch = 0 : i64, scratch_operands = 0 : i64, tpu.core_type = #tpu.core_type<tc>, window_params = [{pipeline_mode = #tpu.pipeline_mode<synchronous>, transform_indices = @transform_0, window_bounds = array<i64: 8, 72>}, {pipeline_mode = #tpu.pipeline_mode<synchronous>, transform_indices = @transform_1, window_bounds = array<i64: 72, 32>}, {pipeline_mode = #tpu.pipeline_mode<synchronous>, transform_indices = @transform_2, window_bounds = array<i64: 8, 1>}, {pipeline_mode = #tpu.pipeline_mode<synchronous>, transform_indices = @transform_3, window_bounds = array<i64: 8, 32>}, {pipeline_mode = #tpu.pipeline_mode<synchronous>, transform_indices = @transform_4, window_bounds = array<i64: 8, 32>}]} {
    %c0 = arith.constant 0 : index
    %c0_0 = arith.constant 0 : index
    %0 = vector.load %arg1[%c0, %c0_0] : memref<8x72xbf16, #tpu.memory_space<vmem>>, vector<8x72xbf16>
    %c0_1 = arith.constant 0 : index
    %c0_2 = arith.constant 0 : index
    %1 = vector.load %arg2[%c0_1, %c0_2] : memref<72x32xbf16, #tpu.memory_space<vmem>>, vector<72x32xbf16>
    %cst = arith.constant dense<0.000000e+00> : vector<8x32xf32>
    %2 = tpu.matmul %0, %1, %cst {dimension_numbers = #tpu.dot_dimension_numbers<[1], [0], [0], [1], [0, 0, 1, 1], [], []>} : vector<8x72xbf16>, vector<72x32xbf16>, vector<8x32xf32> -> vector<8x32xf32>
    %c0_3 = arith.constant 0 : index
    %c0_4 = arith.constant 0 : index
    %3 = vector.load %arg3[%c0_3, %c0_4] : memref<8x1xf32, #tpu.memory_space<vmem>>, vector<8x1xf32>
    %4 = vector.broadcast %3 : vector<8x1xf32> to vector<8x32xf32>
    %5 = arith.addf %2, %4 : vector<8x32xf32>
    %c0_5 = arith.constant 0 : index
    %c0_6 = arith.constant 0 : index
    %6 = vector.load %arg4[%c0_5, %c0_6] : memref<8x32xf32, #tpu.memory_space<vmem>>, vector<8x32xf32>
    %7 = arith.addf %5, %6 : vector<8x32xf32>
    %cst_7 = arith.constant 0.000000e+00 : f32
    %8 = vector.broadcast %cst_7 : f32 to vector<8x32xf32>
    %9 = arith.maximumf %7, %8 : vector<8x32xf32>
    %c0_8 = arith.constant 0 : index
    %c0_9 = arith.constant 0 : index
    %10 = vector.load %arg5[%c0_8, %c0_9] : memref<8x32xf32, #tpu.memory_space<vmem>>, vector<8x32xf32>
    tpu.vector_store %arg5[%c0_8, %c0_9], %9 {strides = array<i32>} : memref<8x32xf32, #tpu.memory_space<vmem>>, vector<8x32xf32>,
    return
  }
  func.func @transform_0(%arg0: i32) -> (i32, i32) {
    %c0_i32 = arith.constant 0 : i32
    %c0_i32_0 = arith.constant 0 : i32
    %c0_i32_1 = arith.constant 0 : i32
    return %c0_i32, %c0_i32_0 : i32, i32
  }
  func.func @transform_1(%arg0: i32) -> (i32, i32) {
    %c0_i32 = arith.constant 0 : i32
    %c0_i32_0 = arith.constant 0 : i32
    %c0_i32_1 = arith.constant 0 : i32
    return %c0_i32, %c0_i32_0 : i32, i32
  }
  func.func @transform_2(%arg0: i32) -> (i32, i32) {
    %c0_i32 = arith.constant 0 : i32
    %c0_i32_0 = arith.constant 0 : i32
    %c0_i32_1 = arith.constant 0 : i32
    return %c0_i32, %c0_i32_0 : i32, i32
  }
  func.func @transform_3(%arg0: i32) -> (i32, i32) {
    %c0_i32 = arith.constant 0 : i32
    %c0_i32_0 = arith.constant 0 : i32
    %c0_i32_1 = arith.constant 0 : i32
    return %c0_i32, %c0_i32_0 : i32, i32
  }
  func.func @transform_4(%arg0: i32) -> (i32, i32) {
    %c0_i32 = arith.constant 0 : i32
    %c0_i32_0 = arith.constant 0 : i32
    %c0_i32_1 = arith.constant 0 : i32
    return %c0_i32, %c0_i32_0 : i32, i32
  }
}

module attributes {stable_mosaic.version = 11 : i64} {
  func.func @_conv_relu_kernel(%arg0: i32, %arg1: memref<8x72xbf16, #tpu.memory_space<vmem>>, %arg2: memref<72x32xbf16, #tpu.memory_space<vmem>>, %arg3: memref<8x1xf32, #tpu.memory_space<vmem>>, %arg4: memref<8x32xf32, #tpu.memory_space<vmem>>) attributes {dimension_semantics = [#tpu.dimension_semantics<arbitrary>], iteration_bounds = array<i64: 1>, scalar_prefetch = 0 : i64, scratch_operands = 0 : i64, tpu.core_type = #tpu.core_type<tc>, window_params = [{pipeline_mode = #tpu.pipeline_mode<synchronous>, transform_indices = @transform_0, window_bounds = array<i64: 8, 72>}, {pipeline_mode = #tpu.pipeline_mode<synchronous>, transform_indices = @transform_1, window_bounds = array<i64: 72, 32>}, {pipeline_mode = #tpu.pipeline_mode<synchronous>, transform_indices = @transform_2, window_bounds = array<i64: 8, 1>}, {pipeline_mode = #tpu.pipeline_mode<synchronous>, transform_indices = @transform_3, window_bounds = array<i64: 8, 32>}]} {
    %c0 = arith.constant 0 : index
    %c0_0 = arith.constant 0 : index
    %0 = vector.load %arg1[%c0, %c0_0] : memref<8x72xbf16, #tpu.memory_space<vmem>>, vector<8x72xbf16>
    %c0_1 = arith.constant 0 : index
    %c0_2 = arith.constant 0 : index
    %1 = vector.load %arg2[%c0_1, %c0_2] : memref<72x32xbf16, #tpu.memory_space<vmem>>, vector<72x32xbf16>
    %cst = arith.constant dense<0.000000e+00> : vector<8x32xf32>
    %2 = tpu.matmul %0, %1, %cst {dimension_numbers = #tpu.dot_dimension_numbers<[1], [0], [0], [1], [0, 0, 1, 1], [], []>} : vector<8x72xbf16>, vector<72x32xbf16>, vector<8x32xf32> -> vector<8x32xf32>
    %c0_3 = arith.constant 0 : index
    %c0_4 = arith.constant 0 : index
    %3 = vector.load %arg3[%c0_3, %c0_4] : memref<8x1xf32, #tpu.memory_space<vmem>>, vector<8x1xf32>
    %4 = vector.broadcast %3 : vector<8x1xf32> to vector<8x32xf32>
    %5 = arith.addf %2, %4 : vector<8x32xf32>
    %cst_5 = arith.constant 0.000000e+00 : f32
    %6 = vector.broadcast %cst_5 : f32 to vector<8x32xf32>
    %7 = arith.maximumf %5, %6 : vector<8x32xf32>
    %c0_6 = arith.constant 0 : index
    %c0_7 = arith.constant 0 : index
    %8 = vector.load %arg4[%c0_6, %c0_7] : memref<8x32xf32, #tpu.memory_space<vmem>>, vector<8x32xf32>
    tpu.vector_store %arg4[%c0_6, %c0_7], %7 {strides = array<i32>} : memref<8x32xf32, #tpu.memory_space<vmem>>, vector<8x32xf32>,
    return
  }
  func.func @transform_0(%arg0: i32) -> (i32, i32) {
    %c0_i32 = arith.constant 0 : i32
    %c0_i32_0 = arith.constant 0 : i32
    %c0_i32_1 = arith.constant 0 : i32
    return %c0_i32, %c0_i32_0 : i32, i32
  }
  func.func @transform_1(%arg0: i32) -> (i32, i32) {
    %c0_i32 = arith.constant 0 : i32
    %c0_i32_0 = arith.constant 0 : i32
    %c0_i32_1 = arith.constant 0 : i32
    return %c0_i32, %c0_i32_0 : i32, i32
  }
  func.func @transform_2(%arg0: i32) -> (i32, i32) {
    %c0_i32 = arith.constant 0 : i32
    %c0_i32_0 = arith.constant 0 : i32
    %c0_i32_1 = arith.constant 0 : i32
    return %c0_i32, %c0_i32_0 : i32, i32
  }
  func.func @transform_3(%arg0: i32) -> (i32, i32) {
    %c0_i32 = arith.constant 0 : i32
    %c0_i32_0 = arith.constant 0 : i32
    %c0_i32_1 = arith.constant 0 : i32
    return %c0_i32, %c0_i32_0 : i32, i32
  }
}

module attributes {stable_mosaic.version = 11 : i64} {
  func.func @_conv_bn_sigmoid_kernel(%arg0: i32, %arg1: memref<8x144xbf16, #tpu.memory_space<vmem>>, %arg2: memref<144x32xbf16, #tpu.memory_space<vmem>>, %arg3: memref<8x1xf32, #tpu.memory_space<vmem>>, %arg4: memref<8x1xf32, #tpu.memory_space<vmem>>, %arg5: memref<8x1xf32, #tpu.memory_space<vmem>>, %arg6: memref<8x32xf32, #tpu.memory_space<vmem>>) attributes {dimension_semantics = [#tpu.dimension_semantics<arbitrary>], iteration_bounds = array<i64: 1>, scalar_prefetch = 0 : i64, scratch_operands = 0 : i64, tpu.core_type = #tpu.core_type<tc>, window_params = [{pipeline_mode = #tpu.pipeline_mode<synchronous>, transform_indices = @transform_0, window_bounds = array<i64: 8, 144>}, {pipeline_mode = #tpu.pipeline_mode<synchronous>, transform_indices = @transform_1, window_bounds = array<i64: 144, 32>}, {pipeline_mode = #tpu.pipeline_mode<synchronous>, transform_indices = @transform_2, window_bounds = array<i64: 8, 1>}, {pipeline_mode = #tpu.pipeline_mode<synchronous>, transform_indices = @transform_3, window_bounds = array<i64: 8, 1>}, {pipeline_mode = #tpu.pipeline_mode<synchronous>, transform_indices = @transform_4, window_bounds = array<i64: 8, 1>}, {pipeline_mode = #tpu.pipeline_mode<synchronous>, transform_indices = @transform_5, window_bounds = array<i64: 8, 32>}]} {
    %c0 = arith.constant 0 : index
    %c0_0 = arith.constant 0 : index
    %0 = vector.load %arg1[%c0, %c0_0] : memref<8x144xbf16, #tpu.memory_space<vmem>>, vector<8x144xbf16>
    %c0_1 = arith.constant 0 : index
    %c0_2 = arith.constant 0 : index
    %1 = vector.load %arg2[%c0_1, %c0_2] : memref<144x32xbf16, #tpu.memory_space<vmem>>, vector<144x32xbf16>
    %cst = arith.constant dense<0.000000e+00> : vector<8x32xf32>
    %2 = tpu.matmul %0, %1, %cst {dimension_numbers = #tpu.dot_dimension_numbers<[1], [0], [0], [1], [0, 0, 1, 1], [], []>} : vector<8x144xbf16>, vector<144x32xbf16>, vector<8x32xf32> -> vector<8x32xf32>
    %c0_3 = arith.constant 0 : index
    %c0_4 = arith.constant 0 : index
    %3 = vector.load %arg3[%c0_3, %c0_4] : memref<8x1xf32, #tpu.memory_space<vmem>>, vector<8x1xf32>
    %4 = vector.broadcast %3 : vector<8x1xf32> to vector<8x32xf32>
    %5 = arith.addf %2, %4 : vector<8x32xf32>
    %cst_5 = arith.constant dense<0.000000e+00> : vector<8xf32>
    %6 = vector.multi_reduction <add>, %5, %cst_5 [1] : vector<8x32xf32> to vector<8xf32>
    %7 = vector.shape_cast %6 : vector<8xf32> to vector<8x1xf32>
    %cst_6 = arith.constant 3.200000e+01 : f32
    %8 = vector.broadcast %cst_6 : f32 to vector<8x1xf32>
    %9 = arith.divf %7, %8 : vector<8x1xf32>
    %10 = vector.broadcast %9 : vector<8x1xf32> to vector<8x32xf32>
    %11 = arith.subf %5, %10 : vector<8x32xf32>
    %12 = arith.mulf %11, %11 : vector<8x32xf32>
    %cst_7 = arith.constant dense<0.000000e+00> : vector<8xf32>
    %13 = vector.multi_reduction <add>, %12, %cst_7 [1] : vector<8x32xf32> to vector<8xf32>
    %14 = vector.shape_cast %13 : vector<8xf32> to vector<8x1xf32>
    %cst_8 = arith.constant 3.200000e+01 : f32
    %15 = vector.broadcast %cst_8 : f32 to vector<8x1xf32>
    %16 = arith.divf %14, %15 : vector<8x1xf32>
    %c0_9 = arith.constant 0 : index
    %c0_10 = arith.constant 0 : index
    %17 = vector.load %arg4[%c0_9, %c0_10] : memref<8x1xf32, #tpu.memory_space<vmem>>, vector<8x1xf32>
    %cst_11 = arith.constant 9.99999974E-6 : f32
    %18 = vector.broadcast %cst_11 : f32 to vector<8x1xf32>
    %19 = arith.addf %16, %18 : vector<8x1xf32>
    %20 = math.rsqrt %19 : vector<8x1xf32>
    %21 = arith.mulf %17, %20 : vector<8x1xf32>
    %22 = vector.broadcast %9 : vector<8x1xf32> to vector<8x32xf32>
    %23 = arith.subf %5, %22 : vector<8x32xf32>
    %24 = vector.broadcast %21 : vector<8x1xf32> to vector<8x32xf32>
    %25 = arith.mulf %23, %24 : vector<8x32xf32>
    %c0_12 = arith.constant 0 : index
    %c0_13 = arith.constant 0 : index
    %26 = vector.load %arg5[%c0_12, %c0_13] : memref<8x1xf32, #tpu.memory_space<vmem>>, vector<8x1xf32>
    %27 = vector.broadcast %26 : vector<8x1xf32> to vector<8x32xf32>
    %28 = arith.addf %25, %27 : vector<8x32xf32>
    %cst_14 = arith.constant 0.000000e+00 : f32
    %29 = vector.broadcast %cst_14 : f32 to vector<8x32xf32>
    %30 = arith.subf %29, %28 : vector<8x32xf32>
    %31 = math.exp %30 : vector<8x32xf32>
    %cst_15 = arith.constant 1.000000e+00 : f32
    %32 = vector.broadcast %cst_15 : f32 to vector<8x32xf32>
    %33 = arith.addf %32, %31 : vector<8x32xf32>
    %cst_16 = arith.constant 1.000000e+00 : f32
    %34 = vector.broadcast %cst_16 : f32 to vector<8x32xf32>
    %35 = arith.divf %34, %33 : vector<8x32xf32>
    %c0_17 = arith.constant 0 : index
    %c0_18 = arith.constant 0 : index
    %36 = vector.load %arg6[%c0_17, %c0_18] : memref<8x32xf32, #tpu.memory_space<vmem>>, vector<8x32xf32>
    tpu.vector_store %arg6[%c0_17, %c0_18], %35 {strides = array<i32>} : memref<8x32xf32, #tpu.memory_space<vmem>>, vector<8x32xf32>,
    return
  }
  func.func @transform_0(%arg0: i32) -> (i32, i32) {
    %c0_i32 = arith.constant 0 : i32
    %c0_i32_0 = arith.constant 0 : i32
    %c0_i32_1 = arith.constant 0 : i32
    return %c0_i32, %c0_i32_0 : i32, i32
  }
  func.func @transform_1(%arg0: i32) -> (i32, i32) {
    %c0_i32 = arith.constant 0 : i32
    %c0_i32_0 = arith.constant 0 : i32
    %c0_i32_1 = arith.constant 0 : i32
    return %c0_i32, %c0_i32_0 : i32, i32
  }
  func.func @transform_2(%arg0: i32) -> (i32, i32) {
    %c0_i32 = arith.constant 0 : i32
    %c0_i32_0 = arith.constant 0 : i32
    %c0_i32_1 = arith.constant 0 : i32
    return %c0_i32, %c0_i32_0 : i32, i32
  }
  func.func @transform_3(%arg0: i32) -> (i32, i32) {
    %c0_i32 = arith.constant 0 : i32
    %c0_i32_0 = arith.constant 0 : i32
    %c0_i32_1 = arith.constant 0 : i32
    return %c0_i32, %c0_i32_0 : i32, i32
  }
  func.func @transform_4(%arg0: i32) -> (i32, i32) {
    %c0_i32 = arith.constant 0 : i32
    %c0_i32_0 = arith.constant 0 : i32
    %c0_i32_1 = arith.constant 0 : i32
    return %c0_i32, %c0_i32_0 : i32, i32
  }
  func.func @transform_5(%arg0: i32) -> (i32, i32) {
    %c0_i32 = arith.constant 0 : i32
    %c0_i32_0 = arith.constant 0 : i32
    %c0_i32_1 = arith.constant 0 : i32
    return %c0_i32, %c0_i32_0 : i32, i32
  }
}

module attributes {stable_mosaic.version = 11 : i64} {
  func.func @_conv_bn_sigmoid_kernel(%arg0: i32, %arg1: memref<8x72xbf16, #tpu.memory_space<vmem>>, %arg2: memref<72x128xbf16, #tpu.memory_space<vmem>>, %arg3: memref<8x1xf32, #tpu.memory_space<vmem>>, %arg4: memref<8x1xf32, #tpu.memory_space<vmem>>, %arg5: memref<8x1xf32, #tpu.memory_space<vmem>>, %arg6: memref<8x128xf32, #tpu.memory_space<vmem>>) attributes {dimension_semantics = [#tpu.dimension_semantics<arbitrary>], iteration_bounds = array<i64: 1>, scalar_prefetch = 0 : i64, scratch_operands = 0 : i64, tpu.core_type = #tpu.core_type<tc>, window_params = [{pipeline_mode = #tpu.pipeline_mode<synchronous>, transform_indices = @transform_0, window_bounds = array<i64: 8, 72>}, {pipeline_mode = #tpu.pipeline_mode<synchronous>, transform_indices = @transform_1, window_bounds = array<i64: 72, 128>}, {pipeline_mode = #tpu.pipeline_mode<synchronous>, transform_indices = @transform_2, window_bounds = array<i64: 8, 1>}, {pipeline_mode = #tpu.pipeline_mode<synchronous>, transform_indices = @transform_3, window_bounds = array<i64: 8, 1>}, {pipeline_mode = #tpu.pipeline_mode<synchronous>, transform_indices = @transform_4, window_bounds = array<i64: 8, 1>}, {pipeline_mode = #tpu.pipeline_mode<synchronous>, transform_indices = @transform_5, window_bounds = array<i64: 8, 128>}]} {
    %c0 = arith.constant 0 : index
    %c0_0 = arith.constant 0 : index
    %0 = vector.load %arg1[%c0, %c0_0] : memref<8x72xbf16, #tpu.memory_space<vmem>>, vector<8x72xbf16>
    %c0_1 = arith.constant 0 : index
    %c0_2 = arith.constant 0 : index
    %1 = vector.load %arg2[%c0_1, %c0_2] : memref<72x128xbf16, #tpu.memory_space<vmem>>, vector<72x128xbf16>
    %cst = arith.constant dense<0.000000e+00> : vector<8x128xf32>
    %2 = tpu.matmul %0, %1, %cst {dimension_numbers = #tpu.dot_dimension_numbers<[1], [0], [0], [1], [0, 0, 1, 1], [], []>} : vector<8x72xbf16>, vector<72x128xbf16>, vector<8x128xf32> -> vector<8x128xf32>
    %c0_3 = arith.constant 0 : index
    %c0_4 = arith.constant 0 : index
    %3 = vector.load %arg3[%c0_3, %c0_4] : memref<8x1xf32, #tpu.memory_space<vmem>>, vector<8x1xf32>
    %4 = vector.broadcast %3 : vector<8x1xf32> to vector<8x128xf32>
    %5 = arith.addf %2, %4 : vector<8x128xf32>
    %cst_5 = arith.constant dense<0.000000e+00> : vector<8xf32>
    %6 = vector.multi_reduction <add>, %5, %cst_5 [1] : vector<8x128xf32> to vector<8xf32>
    %7 = vector.shape_cast %6 : vector<8xf32> to vector<8x1xf32>
    %cst_6 = arith.constant 1.280000e+02 : f32
    %8 = vector.broadcast %cst_6 : f32 to vector<8x1xf32>
    %9 = arith.divf %7, %8 : vector<8x1xf32>
    %10 = vector.broadcast %9 : vector<8x1xf32> to vector<8x128xf32>
    %11 = arith.subf %5, %10 : vector<8x128xf32>
    %12 = arith.mulf %11, %11 : vector<8x128xf32>
    %cst_7 = arith.constant dense<0.000000e+00> : vector<8xf32>
    %13 = vector.multi_reduction <add>, %12, %cst_7 [1] : vector<8x128xf32> to vector<8xf32>
    %14 = vector.shape_cast %13 : vector<8xf32> to vector<8x1xf32>
    %cst_8 = arith.constant 1.280000e+02 : f32
    %15 = vector.broadcast %cst_8 : f32 to vector<8x1xf32>
    %16 = arith.divf %14, %15 : vector<8x1xf32>
    %c0_9 = arith.constant 0 : index
    %c0_10 = arith.constant 0 : index
    %17 = vector.load %arg4[%c0_9, %c0_10] : memref<8x1xf32, #tpu.memory_space<vmem>>, vector<8x1xf32>
    %cst_11 = arith.constant 9.99999974E-6 : f32
    %18 = vector.broadcast %cst_11 : f32 to vector<8x1xf32>
    %19 = arith.addf %16, %18 : vector<8x1xf32>
    %20 = math.rsqrt %19 : vector<8x1xf32>
    %21 = arith.mulf %17, %20 : vector<8x1xf32>
    %22 = vector.broadcast %9 : vector<8x1xf32> to vector<8x128xf32>
    %23 = arith.subf %5, %22 : vector<8x128xf32>
    %24 = vector.broadcast %21 : vector<8x1xf32> to vector<8x128xf32>
    %25 = arith.mulf %23, %24 : vector<8x128xf32>
    %c0_12 = arith.constant 0 : index
    %c0_13 = arith.constant 0 : index
    %26 = vector.load %arg5[%c0_12, %c0_13] : memref<8x1xf32, #tpu.memory_space<vmem>>, vector<8x1xf32>
    %27 = vector.broadcast %26 : vector<8x1xf32> to vector<8x128xf32>
    %28 = arith.addf %25, %27 : vector<8x128xf32>
    %cst_14 = arith.constant 0.000000e+00 : f32
    %29 = vector.broadcast %cst_14 : f32 to vector<8x128xf32>
    %30 = arith.subf %29, %28 : vector<8x128xf32>
    %31 = math.exp %30 : vector<8x128xf32>
    %cst_15 = arith.constant 1.000000e+00 : f32
    %32 = vector.broadcast %cst_15 : f32 to vector<8x128xf32>
    %33 = arith.addf %32, %31 : vector<8x128xf32>
    %cst_16 = arith.constant 1.000000e+00 : f32
    %34 = vector.broadcast %cst_16 : f32 to vector<8x128xf32>
    %35 = arith.divf %34, %33 : vector<8x128xf32>
    %c0_17 = arith.constant 0 : index
    %c0_18 = arith.constant 0 : index
    %36 = vector.load %arg6[%c0_17, %c0_18] : memref<8x128xf32, #tpu.memory_space<vmem>>, vector<8x128xf32>
    tpu.vector_store %arg6[%c0_17, %c0_18], %35 {strides = array<i32>} : memref<8x128xf32, #tpu.memory_space<vmem>>, vector<8x128xf32>,
    return
  }
  func.func @transform_0(%arg0: i32) -> (i32, i32) {
    %c0_i32 = arith.constant 0 : i32
    %c0_i32_0 = arith.constant 0 : i32
    %c0_i32_1 = arith.constant 0 : i32
    return %c0_i32, %c0_i32_0 : i32, i32
  }
  func.func @transform_1(%arg0: i32) -> (i32, i32) {
    %c0_i32 = arith.constant 0 : i32
    %c0_i32_0 = arith.constant 0 : i32
    %c0_i32_1 = arith.constant 0 : i32
    return %c0_i32, %c0_i32_0 : i32, i32
  }
  func.func @transform_2(%arg0: i32) -> (i32, i32) {
    %c0_i32 = arith.constant 0 : i32
    %c0_i32_0 = arith.constant 0 : i32
    %c0_i32_1 = arith.constant 0 : i32
    return %c0_i32, %c0_i32_0 : i32, i32
  }
  func.func @transform_3(%arg0: i32) -> (i32, i32) {
    %c0_i32 = arith.constant 0 : i32
    %c0_i32_0 = arith.constant 0 : i32
    %c0_i32_1 = arith.constant 0 : i32
    return %c0_i32, %c0_i32_0 : i32, i32
  }
  func.func @transform_4(%arg0: i32) -> (i32, i32) {
    %c0_i32 = arith.constant 0 : i32
    %c0_i32_0 = arith.constant 0 : i32
    %c0_i32_1 = arith.constant 0 : i32
    return %c0_i32, %c0_i32_0 : i32, i32
  }
  func.func @transform_5(%arg0: i32) -> (i32, i32) {
    %c0_i32 = arith.constant 0 : i32
    %c0_i32_0 = arith.constant 0 : i32
    %c0_i32_1 = arith.constant 0 : i32
    return %c0_i32, %c0_i32_0 : i32, i32
  }
}

module attributes {stable_mosaic.version = 11 : i64} {
  func.func @_conv_bn_sigmoid_kernel(%arg0: i32, %arg1: memref<8x144xbf16, #tpu.memory_space<vmem>>, %arg2: memref<144x128xbf16, #tpu.memory_space<vmem>>, %arg3: memref<8x1xf32, #tpu.memory_space<vmem>>, %arg4: memref<8x1xf32, #tpu.memory_space<vmem>>, %arg5: memref<8x1xf32, #tpu.memory_space<vmem>>, %arg6: memref<8x128xf32, #tpu.memory_space<vmem>>) attributes {dimension_semantics = [#tpu.dimension_semantics<arbitrary>], iteration_bounds = array<i64: 1>, scalar_prefetch = 0 : i64, scratch_operands = 0 : i64, tpu.core_type = #tpu.core_type<tc>, window_params = [{pipeline_mode = #tpu.pipeline_mode<synchronous>, transform_indices = @transform_0, window_bounds = array<i64: 8, 144>}, {pipeline_mode = #tpu.pipeline_mode<synchronous>, transform_indices = @transform_1, window_bounds = array<i64: 144, 128>}, {pipeline_mode = #tpu.pipeline_mode<synchronous>, transform_indices = @transform_2, window_bounds = array<i64: 8, 1>}, {pipeline_mode = #tpu.pipeline_mode<synchronous>, transform_indices = @transform_3, window_bounds = array<i64: 8, 1>}, {pipeline_mode = #tpu.pipeline_mode<synchronous>, transform_indices = @transform_4, window_bounds = array<i64: 8, 1>}, {pipeline_mode = #tpu.pipeline_mode<synchronous>, transform_indices = @transform_5, window_bounds = array<i64: 8, 128>}]} {
    %c0 = arith.constant 0 : index
    %c0_0 = arith.constant 0 : index
    %0 = vector.load %arg1[%c0, %c0_0] : memref<8x144xbf16, #tpu.memory_space<vmem>>, vector<8x144xbf16>
    %c0_1 = arith.constant 0 : index
    %c0_2 = arith.constant 0 : index
    %1 = vector.load %arg2[%c0_1, %c0_2] : memref<144x128xbf16, #tpu.memory_space<vmem>>, vector<144x128xbf16>
    %cst = arith.constant dense<0.000000e+00> : vector<8x128xf32>
    %2 = tpu.matmul %0, %1, %cst {dimension_numbers = #tpu.dot_dimension_numbers<[1], [0], [0], [1], [0, 0, 1, 1], [], []>} : vector<8x144xbf16>, vector<144x128xbf16>, vector<8x128xf32> -> vector<8x128xf32>
    %c0_3 = arith.constant 0 : index
    %c0_4 = arith.constant 0 : index
    %3 = vector.load %arg3[%c0_3, %c0_4] : memref<8x1xf32, #tpu.memory_space<vmem>>, vector<8x1xf32>
    %4 = vector.broadcast %3 : vector<8x1xf32> to vector<8x128xf32>
    %5 = arith.addf %2, %4 : vector<8x128xf32>
    %cst_5 = arith.constant dense<0.000000e+00> : vector<8xf32>
    %6 = vector.multi_reduction <add>, %5, %cst_5 [1] : vector<8x128xf32> to vector<8xf32>
    %7 = vector.shape_cast %6 : vector<8xf32> to vector<8x1xf32>
    %cst_6 = arith.constant 1.280000e+02 : f32
    %8 = vector.broadcast %cst_6 : f32 to vector<8x1xf32>
    %9 = arith.divf %7, %8 : vector<8x1xf32>
    %10 = vector.broadcast %9 : vector<8x1xf32> to vector<8x128xf32>
    %11 = arith.subf %5, %10 : vector<8x128xf32>
    %12 = arith.mulf %11, %11 : vector<8x128xf32>
    %cst_7 = arith.constant dense<0.000000e+00> : vector<8xf32>
    %13 = vector.multi_reduction <add>, %12, %cst_7 [1] : vector<8x128xf32> to vector<8xf32>
    %14 = vector.shape_cast %13 : vector<8xf32> to vector<8x1xf32>
    %cst_8 = arith.constant 1.280000e+02 : f32
    %15 = vector.broadcast %cst_8 : f32 to vector<8x1xf32>
    %16 = arith.divf %14, %15 : vector<8x1xf32>
    %c0_9 = arith.constant 0 : index
    %c0_10 = arith.constant 0 : index
    %17 = vector.load %arg4[%c0_9, %c0_10] : memref<8x1xf32, #tpu.memory_space<vmem>>, vector<8x1xf32>
    %cst_11 = arith.constant 9.99999974E-6 : f32
    %18 = vector.broadcast %cst_11 : f32 to vector<8x1xf32>
    %19 = arith.addf %16, %18 : vector<8x1xf32>
    %20 = math.rsqrt %19 : vector<8x1xf32>
    %21 = arith.mulf %17, %20 : vector<8x1xf32>
    %22 = vector.broadcast %9 : vector<8x1xf32> to vector<8x128xf32>
    %23 = arith.subf %5, %22 : vector<8x128xf32>
    %24 = vector.broadcast %21 : vector<8x1xf32> to vector<8x128xf32>
    %25 = arith.mulf %23, %24 : vector<8x128xf32>
    %c0_12 = arith.constant 0 : index
    %c0_13 = arith.constant 0 : index
    %26 = vector.load %arg5[%c0_12, %c0_13] : memref<8x1xf32, #tpu.memory_space<vmem>>, vector<8x1xf32>
    %27 = vector.broadcast %26 : vector<8x1xf32> to vector<8x128xf32>
    %28 = arith.addf %25, %27 : vector<8x128xf32>
    %cst_14 = arith.constant 0.000000e+00 : f32
    %29 = vector.broadcast %cst_14 : f32 to vector<8x128xf32>
    %30 = arith.subf %29, %28 : vector<8x128xf32>
    %31 = math.exp %30 : vector<8x128xf32>
    %cst_15 = arith.constant 1.000000e+00 : f32
    %32 = vector.broadcast %cst_15 : f32 to vector<8x128xf32>
    %33 = arith.addf %32, %31 : vector<8x128xf32>
    %cst_16 = arith.constant 1.000000e+00 : f32
    %34 = vector.broadcast %cst_16 : f32 to vector<8x128xf32>
    %35 = arith.divf %34, %33 : vector<8x128xf32>
    %c0_17 = arith.constant 0 : index
    %c0_18 = arith.constant 0 : index
    %36 = vector.load %arg6[%c0_17, %c0_18] : memref<8x128xf32, #tpu.memory_space<vmem>>, vector<8x128xf32>
    tpu.vector_store %arg6[%c0_17, %c0_18], %35 {strides = array<i32>} : memref<8x128xf32, #tpu.memory_space<vmem>>, vector<8x128xf32>,
    return
  }
  func.func @transform_0(%arg0: i32) -> (i32, i32) {
    %c0_i32 = arith.constant 0 : i32
    %c0_i32_0 = arith.constant 0 : i32
    %c0_i32_1 = arith.constant 0 : i32
    return %c0_i32, %c0_i32_0 : i32, i32
  }
  func.func @transform_1(%arg0: i32) -> (i32, i32) {
    %c0_i32 = arith.constant 0 : i32
    %c0_i32_0 = arith.constant 0 : i32
    %c0_i32_1 = arith.constant 0 : i32
    return %c0_i32, %c0_i32_0 : i32, i32
  }
  func.func @transform_2(%arg0: i32) -> (i32, i32) {
    %c0_i32 = arith.constant 0 : i32
    %c0_i32_0 = arith.constant 0 : i32
    %c0_i32_1 = arith.constant 0 : i32
    return %c0_i32, %c0_i32_0 : i32, i32
  }
  func.func @transform_3(%arg0: i32) -> (i32, i32) {
    %c0_i32 = arith.constant 0 : i32
    %c0_i32_0 = arith.constant 0 : i32
    %c0_i32_1 = arith.constant 0 : i32
    return %c0_i32, %c0_i32_0 : i32, i32
  }
  func.func @transform_4(%arg0: i32) -> (i32, i32) {
    %c0_i32 = arith.constant 0 : i32
    %c0_i32_0 = arith.constant 0 : i32
    %c0_i32_1 = arith.constant 0 : i32
    return %c0_i32, %c0_i32_0 : i32, i32
  }
  func.func @transform_5(%arg0: i32) -> (i32, i32) {
    %c0_i32 = arith.constant 0 : i32
    %c0_i32_0 = arith.constant 0 : i32
    %c0_i32_1 = arith.constant 0 : i32
    return %c0_i32, %c0_i32_0 : i32, i32
  }
}

module attributes {stable_mosaic.version = 11 : i64} {
  func.func @_conv_bn_sigmoid_kernel(%arg0: i32, %arg1: memref<8x72xbf16, #tpu.memory_space<vmem>>, %arg2: memref<72x512xbf16, #tpu.memory_space<vmem>>, %arg3: memref<8x1xf32, #tpu.memory_space<vmem>>, %arg4: memref<8x1xf32, #tpu.memory_space<vmem>>, %arg5: memref<8x1xf32, #tpu.memory_space<vmem>>, %arg6: memref<8x512xf32, #tpu.memory_space<vmem>>) attributes {dimension_semantics = [#tpu.dimension_semantics<arbitrary>], iteration_bounds = array<i64: 1>, scalar_prefetch = 0 : i64, scratch_operands = 0 : i64, tpu.core_type = #tpu.core_type<tc>, window_params = [{pipeline_mode = #tpu.pipeline_mode<synchronous>, transform_indices = @transform_0, window_bounds = array<i64: 8, 72>}, {pipeline_mode = #tpu.pipeline_mode<synchronous>, transform_indices = @transform_1, window_bounds = array<i64: 72, 512>}, {pipeline_mode = #tpu.pipeline_mode<synchronous>, transform_indices = @transform_2, window_bounds = array<i64: 8, 1>}, {pipeline_mode = #tpu.pipeline_mode<synchronous>, transform_indices = @transform_3, window_bounds = array<i64: 8, 1>}, {pipeline_mode = #tpu.pipeline_mode<synchronous>, transform_indices = @transform_4, window_bounds = array<i64: 8, 1>}, {pipeline_mode = #tpu.pipeline_mode<synchronous>, transform_indices = @transform_5, window_bounds = array<i64: 8, 512>}]} {
    %c0 = arith.constant 0 : index
    %c0_0 = arith.constant 0 : index
    %0 = vector.load %arg1[%c0, %c0_0] : memref<8x72xbf16, #tpu.memory_space<vmem>>, vector<8x72xbf16>
    %c0_1 = arith.constant 0 : index
    %c0_2 = arith.constant 0 : index
    %1 = vector.load %arg2[%c0_1, %c0_2] : memref<72x512xbf16, #tpu.memory_space<vmem>>, vector<72x512xbf16>
    %cst = arith.constant dense<0.000000e+00> : vector<8x512xf32>
    %2 = tpu.matmul %0, %1, %cst {dimension_numbers = #tpu.dot_dimension_numbers<[1], [0], [0], [1], [0, 0, 1, 1], [], []>} : vector<8x72xbf16>, vector<72x512xbf16>, vector<8x512xf32> -> vector<8x512xf32>
    %c0_3 = arith.constant 0 : index
    %c0_4 = arith.constant 0 : index
    %3 = vector.load %arg3[%c0_3, %c0_4] : memref<8x1xf32, #tpu.memory_space<vmem>>, vector<8x1xf32>
    %4 = vector.broadcast %3 : vector<8x1xf32> to vector<8x512xf32>
    %5 = arith.addf %2, %4 : vector<8x512xf32>
    %cst_5 = arith.constant dense<0.000000e+00> : vector<8xf32>
    %6 = vector.multi_reduction <add>, %5, %cst_5 [1] : vector<8x512xf32> to vector<8xf32>
    %7 = vector.shape_cast %6 : vector<8xf32> to vector<8x1xf32>
    %cst_6 = arith.constant 5.120000e+02 : f32
    %8 = vector.broadcast %cst_6 : f32 to vector<8x1xf32>
    %9 = arith.divf %7, %8 : vector<8x1xf32>
    %10 = vector.broadcast %9 : vector<8x1xf32> to vector<8x512xf32>
    %11 = arith.subf %5, %10 : vector<8x512xf32>
    %12 = arith.mulf %11, %11 : vector<8x512xf32>
    %cst_7 = arith.constant dense<0.000000e+00> : vector<8xf32>
    %13 = vector.multi_reduction <add>, %12, %cst_7 [1] : vector<8x512xf32> to vector<8xf32>
    %14 = vector.shape_cast %13 : vector<8xf32> to vector<8x1xf32>
    %cst_8 = arith.constant 5.120000e+02 : f32
    %15 = vector.broadcast %cst_8 : f32 to vector<8x1xf32>
    %16 = arith.divf %14, %15 : vector<8x1xf32>
    %c0_9 = arith.constant 0 : index
    %c0_10 = arith.constant 0 : index
    %17 = vector.load %arg4[%c0_9, %c0_10] : memref<8x1xf32, #tpu.memory_space<vmem>>, vector<8x1xf32>
    %cst_11 = arith.constant 9.99999974E-6 : f32
    %18 = vector.broadcast %cst_11 : f32 to vector<8x1xf32>
    %19 = arith.addf %16, %18 : vector<8x1xf32>
    %20 = math.rsqrt %19 : vector<8x1xf32>
    %21 = arith.mulf %17, %20 : vector<8x1xf32>
    %22 = vector.broadcast %9 : vector<8x1xf32> to vector<8x512xf32>
    %23 = arith.subf %5, %22 : vector<8x512xf32>
    %24 = vector.broadcast %21 : vector<8x1xf32> to vector<8x512xf32>
    %25 = arith.mulf %23, %24 : vector<8x512xf32>
    %c0_12 = arith.constant 0 : index
    %c0_13 = arith.constant 0 : index
    %26 = vector.load %arg5[%c0_12, %c0_13] : memref<8x1xf32, #tpu.memory_space<vmem>>, vector<8x1xf32>
    %27 = vector.broadcast %26 : vector<8x1xf32> to vector<8x512xf32>
    %28 = arith.addf %25, %27 : vector<8x512xf32>
    %cst_14 = arith.constant 0.000000e+00 : f32
    %29 = vector.broadcast %cst_14 : f32 to vector<8x512xf32>
    %30 = arith.subf %29, %28 : vector<8x512xf32>
    %31 = math.exp %30 : vector<8x512xf32>
    %cst_15 = arith.constant 1.000000e+00 : f32
    %32 = vector.broadcast %cst_15 : f32 to vector<8x512xf32>
    %33 = arith.addf %32, %31 : vector<8x512xf32>
    %cst_16 = arith.constant 1.000000e+00 : f32
    %34 = vector.broadcast %cst_16 : f32 to vector<8x512xf32>
    %35 = arith.divf %34, %33 : vector<8x512xf32>
    %c0_17 = arith.constant 0 : index
    %c0_18 = arith.constant 0 : index
    %36 = vector.load %arg6[%c0_17, %c0_18] : memref<8x512xf32, #tpu.memory_space<vmem>>, vector<8x512xf32>
    tpu.vector_store %arg6[%c0_17, %c0_18], %35 {strides = array<i32>} : memref<8x512xf32, #tpu.memory_space<vmem>>, vector<8x512xf32>,
    return
  }
  func.func @transform_0(%arg0: i32) -> (i32, i32) {
    %c0_i32 = arith.constant 0 : i32
    %c0_i32_0 = arith.constant 0 : i32
    %c0_i32_1 = arith.constant 0 : i32
    return %c0_i32, %c0_i32_0 : i32, i32
  }
  func.func @transform_1(%arg0: i32) -> (i32, i32) {
    %c0_i32 = arith.constant 0 : i32
    %c0_i32_0 = arith.constant 0 : i32
    %c0_i32_1 = arith.constant 0 : i32
    return %c0_i32, %c0_i32_0 : i32, i32
  }
  func.func @transform_2(%arg0: i32) -> (i32, i32) {
    %c0_i32 = arith.constant 0 : i32
    %c0_i32_0 = arith.constant 0 : i32
    %c0_i32_1 = arith.constant 0 : i32
    return %c0_i32, %c0_i32_0 : i32, i32
  }
  func.func @transform_3(%arg0: i32) -> (i32, i32) {
    %c0_i32 = arith.constant 0 : i32
    %c0_i32_0 = arith.constant 0 : i32
    %c0_i32_1 = arith.constant 0 : i32
    return %c0_i32, %c0_i32_0 : i32, i32
  }
  func.func @transform_4(%arg0: i32) -> (i32, i32) {
    %c0_i32 = arith.constant 0 : i32
    %c0_i32_0 = arith.constant 0 : i32
    %c0_i32_1 = arith.constant 0 : i32
    return %c0_i32, %c0_i32_0 : i32, i32
  }
  func.func @transform_5(%arg0: i32) -> (i32, i32) {
    %c0_i32 = arith.constant 0 : i32
    %c0_i32_0 = arith.constant 0 : i32
    %c0_i32_1 = arith.constant 0 : i32
    return %c0_i32, %c0_i32_0 : i32, i32
  }
}

</mosaic_0001>

<bundles_post_ra>
// kernel: u_net_forward.8
= control target key start
LH: loop header
LB: loop body
LE: loop exit
PB: predicated region body
PF: predicated region fallthrough
CT: control target
= control target key end

     0   :  { %vm44_vm0 = vcmask 1043456   ;;  %v152_v0 = vmov 0.0   ;;  %vm153_vm1 = vmmov 0   ;;  %v154_v3 = vmov 0   ;;  %s206_s1 = inlined_call_operand.vmem [shape: bf16[24,128], index: 1, kind: input, shape index: {}]   ;;  %s207_s2 = inlined_call_operand.vmem [shape: f32[8,1], index: 2, kind: input, shape index: {}]   ;;  %s208_s0 = inlined_call_operand.vmem [shape: bf16[8,24], index: 0, kind: input, shape index: {}]   ;;  %s209_s3 = inlined_call_operand.vmem [shape: f32[8,1], index: 3, kind: input, shape index: {}]   ;;  %s210_s4 = inlined_call_operand.vmem [shape: f32[8,1], index: 4, kind: input, shape index: {}]   ;;  %s211_s5 = inlined_call_operand.vmem [shape: f32[8,128], index: 5, kind: output, shape index: {}]  }
   0x1   :  { %131 = vmatprep.subr.bf16.mxu0 %v152_v0  ;;  %v144_v1 = vld [vmem:[%s206_s1 + $0x8] ss:$0 sps:$4 sm:$0xff]   ;;  %135 = vmatprep.mubr.msk.bf16.mxu0 %vm153_vm1, %v152_v0  ;;  %v25_v4 = vld [vmem:[%s207_s2] sm:$0xff]  ;;  %vm40_vm2 = vcmask 195584  }
   0x2   :  { %v46_v2 = vsel %vm44_vm0, %v144_v1, 0  ;;  %142 = vset.pattern.permute.xlu0 %v154_v3  ;;  %143 = vset.pattern.permute.xlu1 %v154_v3  ;;  %v145_v5 = vld [vmem:[%s206_s1] sm:$0xff]  }
   0x3   :  { %132 = vmatpush3.bf16.msra.mxu0 %v46_v2  ;;  %28 = vperm.xlu0 %142, %v25_v4   ;;  %v21_v6 = vld [vmem:[%s208_s0] sm:$0xf] }
   0x4   :  { %133 = vmatprep.subr.bf16.mxu0 %v152_v0  ;;  %v97_v20 = vld [vmem:[%s209_s3] sm:$0xff] }
   0x5   :  { %v107_v23 = vld [vmem:[%s210_s4] sm:$0xff] }
   0x7   :  { %134 = vmatpush3.bf16.msra.mxu0 %v145_v5 }
   0xa   :  { %136 = vmatmul.mubr.msk.bf16.vlgmr.msra.gmra.mxu0 %vm40_vm2, %v21_v6 }
  0x7e   :  { %v29_v7 = vpop.permute.xlu0 %28 }
  0xca   :  { %v82_v8 = vpop.f32.mrf.mxu0 }
  0xcb   :  { %v83_v9 = vadd.f32 %v82_v8, %v29_v7 }
  0xcc   :  { %v137_v10 = vpop.f32.mrf.mxu0 }
  0xcd   :  { %88 = vadd.xlane.f32.xlu0 %v83_v9 }
  0xce   :  { %v85_v11 = vpop.f32.mrf.mxu0 }
  0xd0   :  { %v138_v12 = vpop.f32.mrf.mxu0 }
 0x156   :  { %v89_v13 = vpop.xlane.xlu0 %88 }
 0x157   :  { %v91_v14 = vmul.f32 0.0078125, %v89_v13 }
 0x159   :  { %v92_v15 = vsub.f32 %v83_v9, %v91_v14 }
 0x15b   :  { %v93_v16 = vmul.f32 %v92_v15, %v92_v15 }
 0x15d   :  { %94 = vadd.xlane.f32.xlu1 %v93_v16 }
 0x1e6   :  { %v95_v17 = vpop.xlane.xlu1 %94 }
 0x1e7   :  { %v96_v18 = vmul.f32 0.0078125, %v95_v17 }
 0x1e9   :  { %v98_v19 = vadd.f32 1e-05, %v96_v18 }
 0x1eb   :  { %146 = vrsqrt.f32 %v98_v19 }
 0x1f8   :  { %v147_v21 = vpop.eup %146 }
 0x1f9   :  { %v100_v22 = vmul.f32 %v147_v21, %v97_v20 }
 0x1fb   :  { %103 = vperm.xlu1 %143, %v100_v22  }
 0x1ff   :  { %110 = vperm.xlu1 %143, %v107_v23  }
 0x276   :  { %v104_v24 = vpop.permute.xlu1 %103 }
 0x277   :  { %v106_v25 = vmul.f32 %v104_v24, %v92_v15 }
 0x27a   :  { %v111_v26 = vpop.permute.xlu1 %110 }
 0x27b   :  { %v113_v27 = vadd.f32 %v111_v26, %v106_v25 }
 0x27d   :  { %v114_v28 = vsub.f32 0.0, %v113_v27 }
 0x27f   :  { %v115_v29 = vmul.f32 1.442695, %v114_v28 }
 0x281   :  { %148 = vpow2.f32 %v115_v29 }
 0x28e   :  { %v149_v30 = vpop.eup %148 }
 0x28f   :  { %v117_v31 = vadd.f32 1.0, %v149_v30 }
 0x291   :  { %150 = vrcp.f32 %v117_v31 }
 0x29e   :  { %v151_v32 = vpop.eup %150 }
 0x29f   :  { %120 = vst [vmem:[%s211_s5] sm:$0xff] %v151_v32 }

// kernel: u_net_forward.9
= control target key start
LH: loop header
LB: loop body
LE: loop exit
PB: predicated region body
PF: predicated region fallthrough
CT: control target
= control target key end

     0   :  { %vm68_vm0 = vcmask 1043456   ;;  %v194_v0 = vmov 0.0   ;;  %vm195_vm1 = vmmov 0   ;;  %v196_v3 = vmov 0   ;;  %s260_s1 = inlined_call_operand.vmem [shape: bf16[72,32], index: 1, kind: input, shape index: {}]   ;;  %s261_s2 = inlined_call_operand.vmem [shape: f32[8,1], index: 2, kind: input, shape index: {}]   ;;  %s262_s0 = inlined_call_operand.vmem [shape: bf16[8,72], index: 0, kind: input, shape index: {}]   ;;  %s263_s3 = inlined_call_operand.vmem [shape: f32[8,1], index: 3, kind: input, shape index: {}]   ;;  %s264_s4 = inlined_call_operand.vmem [shape: f32[8,1], index: 4, kind: input, shape index: {}]   ;;  %s265_s5 = inlined_call_operand.vmem [shape: f32[8,32], index: 5, kind: output, shape index: {}]  }
   0x1   :  { %164 = vmatprep.subr.bf16.mxu0 %v194_v0  ;;  %v183_v1 = vld [vmem:[%s260_s1 + $0x20] ss:$0 sps:$4 sm:$0xff]   ;;  %174 = vmatprep.mubr.msk.bf16.mxu0 %vm195_vm1, %v194_v0  ;;  %v184_v4 = vld [vmem:[%s260_s1 + $0x18] sm:$0xff]   ;;  %v185_v6 = vld [vmem:[%s260_s1 + $0x10] sm:$0xff]   ;;  %vm64_vm2 = vcmask 588800   ;;  %vm112_vm3 = vcmask 261120  }
   0x2   :  { %v70_v2 = vsel %vm68_vm0, %v183_v1, 0  ;;  %181 = vset.pattern.permute.xlu0 %v196_v3  ;;  %182 = vset.pattern.permute.xlu1 %v196_v3  ;;  %v31_v5 = vld [vmem:[%s261_s2] sm:$0xff]  ;;  %v186_v7 = vld [vmem:[%s260_s1 + $0x8] sm:$0xff]  }
   0x3   :  { %165 = vmatpush3.bf16.msra.mxu0 %v70_v2  ;;  %34 = vperm.xlu0 %181, %v31_v5   ;;  %v187_v8 = vld [vmem:[%s260_s1] sm:$0xff]  }
   0x4   :  { %166 = vmatprep.subr.bf16.mxu0 %v194_v0  ;;  %v21_v9 = vld [vmem:[%s262_s0] sm:$0xf] }
   0x5   :  { %v124_v25 = vld [vmem:[%s263_s3] sm:$0xff] }
   0x6   :  { %v134_v28 = vld [vmem:[%s264_s4] sm:$0xff] }
   0x7   :  { %167 = vmatpush3.bf16.msra.mxu0 %v184_v4 }
   0x8   :  { %168 = vmatprep.subr.bf16.mxu0 %v194_v0 }
   0xb   :  { %169 = vmatpush3.bf16.msra.mxu0 %v185_v6 }
   0xc   :  { %170 = vmatprep.subr.bf16.mxu0 %v194_v0 }
   0xf   :  { %171 = vmatpush3.bf16.msra.mxu0 %v186_v7 }
  0x10   :  { %172 = vmatprep.subr.bf16.mxu0 %v194_v0 }
  0x13   :  { %173 = vmatpush3.bf16.msra.mxu0 %v187_v8 }
  0x16   :  { %175 = vmatmul.mubr.msk.bf16.vlgmr.msra.gmra.mxu0 %vm64_vm2, %v21_v9 }
  0x7e   :  { %v35_v10 = vpop.permute.xlu0 %34 }
  0xd6   :  { %v106_v11 = vpop.f32.mrf.mxu0 }
  0xd7   :  { %v107_v12 = vadd.f32 %v106_v11, %v35_v10 }
  0xd8   :  { %v176_v13 = vpop.f32.mrf.mxu0 }
  0xd9   :  { %v113_v14 = vsel %vm112_vm3, %v107_v12, 0.0 }
  0xda   :  { %114 = vadd.xlane.f32.xlu0 %v113_v14  ;;  %v109_v15 = vpop.f32.mrf.mxu0 }
  0xdc   :  { %v177_v16 = vpop.f32.mrf.mxu0 }
 0x163   :  { %v115_v17 = vpop.xlane.xlu0 %114 }
 0x164   :  { %v117_v18 = vmul.f32 0.03125, %v115_v17 }
 0x166   :  { %v118_v19 = vsub.f32 %v107_v12, %v117_v18 }
 0x168   :  { %v119_v20 = vmul.f32 %v118_v19, %v118_v19 }
 0x16a   :  { %v120_v21 = vsel %vm112_vm3, %v119_v20, 0.0 }
 0x16b   :  { %121 = vadd.xlane.f32.xlu1 %v120_v21 }
 0x1f4   :  { %v122_v22 = vpop.xlane.xlu1 %121 }
 0x1f5   :  { %v123_v23 = vmul.f32 0.03125, %v122_v22 }
 0x1f7   :  { %v125_v24 = vadd.f32 1e-05, %v123_v23 }
 0x1f9   :  { %188 = vrsqrt.f32 %v125_v24 }
 0x206   :  { %v189_v26 = vpop.eup %188 }
 0x207   :  { %v127_v27 = vmul.f32 %v189_v26, %v124_v25 }
 0x209   :  { %130 = vperm.xlu1 %182, %v127_v27  }
 0x20d   :  { %137 = vperm.xlu1 %182, %v134_v28  }
 0x284   :  { %v131_v29 = vpop.permute.xlu1 %130 }
 0x285   :  { %v133_v30 = vmul.f32 %v131_v29, %v118_v19 }
 0x288   :  { %v138_v31 = vpop.permute.xlu1 %137 }
 0x289   :  { %v140_v32 = vadd.f32 %v138_v31, %v133_v30 }
 0x28b   :  { %v141_v33 = vsub.f32 0.0, %v140_v32 }
 0x28d   :  { %v142_v34 = vmul.f32 1.442695, %v141_v33 }
 0x28f   :  { %190 = vpow2.f32 %v142_v34 }
 0x29c   :  { %v191_v35 = vpop.eup %190 }
 0x29d   :  { %v144_v36 = vadd.f32 1.0, %v191_v35 }
 0x29f   :  { %192 = vrcp.f32 %v144_v36 }
 0x2ac   :  { %v193_v37 = vpop.eup %192 }
 0x2ad   :  { %147 = vst.msk [vmem:[%s265_s5] sm:$0xff] %vm112_vm3, %v193_v37 }

// kernel: u_net_forward.11
= control target key start
LH: loop header
LB: loop body
LE: loop exit
PB: predicated region body
PF: predicated region fallthrough
CT: control target
= control target key end

     0   :  { %vm65_vm0 = vcmask 1043456   ;;  %v153_v0 = vmov 0.0   ;;  %vm154_vm1 = vmmov 0   ;;  %v155_v3 = vmov 0   ;;  %s208_s1 = inlined_call_operand.vmem [shape: bf16[72,32], index: 1, kind: input, shape index: {}]   ;;  %s209_s2 = inlined_call_operand.vmem [shape: f32[8,1], index: 2, kind: input, shape index: {}]   ;;  %s210_s0 = inlined_call_operand.vmem [shape: bf16[8,72], index: 0, kind: input, shape index: {}]   ;;  %s211_s3 = inlined_call_operand.vmem [shape: f32[8,32], index: 3, kind: input, shape index: {}]   ;;  %s212_s4 = inlined_call_operand.vmem [shape: f32[8,32], index: 4, kind: output, shape index: {}]  }
   0x1   :  { %130 = vmatprep.subr.bf16.mxu0 %v153_v0  ;;  %v148_v1 = vld [vmem:[%s208_s1 + $0x20] ss:$0 sps:$4 sm:$0xff]   ;;  %140 = vmatprep.mubr.msk.bf16.mxu0 %vm154_vm1, %v153_v0  ;;  %v149_v4 = vld [vmem:[%s208_s1 + $0x18] sm:$0xff]   ;;  %v150_v6 = vld [vmem:[%s208_s1 + $0x10] sm:$0xff]   ;;  %vm61_vm2 = vcmask 588800   ;;  %vm112_vm3 = vcmask 261120  }
   0x2   :  { %v67_v2 = vsel %vm65_vm0, %v148_v1, 0  ;;  %147 = vset.pattern.permute.xlu0 %v155_v3  ;;  %v28_v5 = vld [vmem:[%s209_s2] sm:$0xff]  ;;  %v151_v7 = vld [vmem:[%s208_s1 + $0x8] sm:$0xff]  }
   0x3   :  { %131 = vmatpush3.bf16.msra.mxu0 %v67_v2  ;;  %31 = vperm.xlu0 %147, %v28_v5   ;;  %v152_v8 = vld [vmem:[%s208_s1] sm:$0xff]  }
   0x4   :  { %132 = vmatprep.subr.bf16.mxu0 %v153_v0  ;;  %v18_v9 = vld [vmem:[%s210_s0] sm:$0xf] }
   0x5   :  { %v109_v12 = vld [vmem:[%s211_s3] sm:$0xff] }
   0x7   :  { %133 = vmatpush3.bf16.msra.mxu0 %v149_v4 }
   0x8   :  { %134 = vmatprep.subr.bf16.mxu0 %v153_v0 }
   0xb   :  { %135 = vmatpush3.bf16.msra.mxu0 %v150_v6 }
   0xc   :  { %136 = vmatprep.subr.bf16.mxu0 %v153_v0 }
   0xf   :  { %137 = vmatpush3.bf16.msra.mxu0 %v151_v7 }
  0x10   :  { %138 = vmatprep.subr.bf16.mxu0 %v153_v0 }
  0x13   :  { %139 = vmatpush3.bf16.msra.mxu0 %v152_v8 }
  0x16   :  { %141 = vmatmul.mubr.msk.bf16.vlgmr.msra.gmra.mxu0 %vm61_vm2, %v18_v9 }
  0x7e   :  { %v32_v10 = vpop.permute.xlu0 %31 }
  0xd6   :  { %v103_v11 = vpop.f32.mrf.mxu0 }
  0xd7   :  { %v104_v13 = vadd.f32 %v103_v11, %v32_v10 }
  0xd8   :  { %v142_v14 = vpop.f32.mrf.mxu0 }
  0xd9   :  { %v110_v15 = vadd.f32 %v109_v12, %v104_v13 }
  0xda   :  { %v106_v16 = vpop.f32.mrf.mxu0 }
  0xdb   :  { %v111_v17 = vmax.f32 %v110_v15, 0.0 }
  0xdc   :  { %v143_v18 = vpop.f32.mrf.mxu0 }
  0xdd   :  { %113 = vst.msk [vmem:[%s212_s4] sm:$0xff] %vm112_vm3, %v111_v17 }

// kernel: u_net_forward.10
= control target key start
LH: loop header
LB: loop body
LE: loop exit
PB: predicated region body
PF: predicated region fallthrough
CT: control target
= control target key end

     0   :  { %vm62_vm0 = vcmask 1043456   ;;  %v148_v0 = vmov 0.0   ;;  %vm149_vm1 = vmmov 0   ;;  %v150_v3 = vmov 0   ;;  %s195_s1 = inlined_call_operand.vmem [shape: bf16[72,32], index: 1, kind: input, shape index: {}]   ;;  %s196_s2 = inlined_call_operand.vmem [shape: f32[8,1], index: 2, kind: input, shape index: {}]   ;;  %s197_s0 = inlined_call_operand.vmem [shape: bf16[8,72], index: 0, kind: input, shape index: {}]   ;;  %s198_s3 = inlined_call_operand.vmem [shape: f32[8,32], index: 3, kind: output, shape index: {}]  }
   0x1   :  { %125 = vmatprep.subr.bf16.mxu0 %v148_v0  ;;  %v143_v1 = vld [vmem:[%s195_s1 + $0x20] ss:$0 sps:$4 sm:$0xff]   ;;  %135 = vmatprep.mubr.msk.bf16.mxu0 %vm149_vm1, %v148_v0  ;;  %v144_v4 = vld [vmem:[%s195_s1 + $0x18] sm:$0xff]   ;;  %v145_v6 = vld [vmem:[%s195_s1 + $0x10] sm:$0xff]   ;;  %vm58_vm2 = vcmask 588800   ;;  %vm107_vm3 = vcmask 261120  }
   0x2   :  { %v64_v2 = vsel %vm62_vm0, %v143_v1, 0  ;;  %142 = vset.pattern.permute.xlu0 %v150_v3  ;;  %v25_v5 = vld [vmem:[%s196_s2] sm:$0xff]  ;;  %v146_v7 = vld [vmem:[%s195_s1 + $0x8] sm:$0xff]  }
   0x3   :  { %126 = vmatpush3.bf16.msra.mxu0 %v64_v2  ;;  %28 = vperm.xlu0 %142, %v25_v5   ;;  %v147_v8 = vld [vmem:[%s195_s1] sm:$0xff]  }
   0x4   :  { %127 = vmatprep.subr.bf16.mxu0 %v148_v0  ;;  %v15_v9 = vld [vmem:[%s197_s0] sm:$0xf] }
   0x7   :  { %128 = vmatpush3.bf16.msra.mxu0 %v144_v4 }
   0x8   :  { %129 = vmatprep.subr.bf16.mxu0 %v148_v0 }
   0xb   :  { %130 = vmatpush3.bf16.msra.mxu0 %v145_v6 }
   0xc   :  { %131 = vmatprep.subr.bf16.mxu0 %v148_v0 }
   0xf   :  { %132 = vmatpush3.bf16.msra.mxu0 %v146_v7 }
  0x10   :  { %133 = vmatprep.subr.bf16.mxu0 %v148_v0 }
  0x13   :  { %134 = vmatpush3.bf16.msra.mxu0 %v147_v8 }
  0x16   :  { %136 = vmatmul.mubr.msk.bf16.vlgmr.msra.gmra.mxu0 %vm58_vm2, %v15_v9 }
  0x7e   :  { %v29_v10 = vpop.permute.xlu0 %28 }
  0xd6   :  { %v100_v11 = vpop.f32.mrf.mxu0 }
  0xd7   :  { %v101_v12 = vadd.f32 %v100_v11, %v29_v10 }
  0xd8   :  { %v137_v13 = vpop.f32.mrf.mxu0 }
  0xd9   :  { %v106_v14 = vmax.f32 %v101_v12, 0.0 }
  0xda   :  { %v103_v15 = vpop.f32.mrf.mxu0 }
  0xdb   :  { %108 = vst.msk [vmem:[%s198_s3] sm:$0xff] %vm107_vm3, %v106_v14 }
  0xdc   :  { %v138_v16 = vpop.f32.mrf.mxu0 }

// kernel: u_net_forward.12
= control target key start
LH: loop header
LB: loop body
LE: loop exit
PB: predicated region body
PF: predicated region fallthrough
CT: control target
= control target key end

     0   :  { %v222_v0 = vmov 0   ;;  %vm106_vm0 = vcmask 130048   ;;  %vm150_vm1 = vcmask 261120   ;;  %s298_s1 = inlined_call_operand.vmem [shape: bf16[144,32], index: 1, kind: input, shape index: {}]   ;;  %s299_s0 = inlined_call_operand.vmem [shape: bf16[8,144], index: 0, kind: input, shape index: {}]   ;;  %s300_s2 = inlined_call_operand.vmem [shape: f32[8,1], index: 2, kind: input, shape index: {}]   ;;  %s301_s3 = inlined_call_operand.vmem [shape: f32[8,1], index: 3, kind: input, shape index: {}]   ;;  %s302_s4 = inlined_call_operand.vmem [shape: f32[8,1], index: 4, kind: input, shape index: {}]   ;;  %s303_s5 = inlined_call_operand.vmem [shape: f32[8,32], index: 5, kind: output, shape index: {}]  }
   0x1   :  { %110 = vmatprep.subr.bf16.mxu0 %v222_v0  ;;  %v205_v1 = vld [vmem:[%s298_s1 + $0x38] sm:$0xff]   ;;  %203 = vset.pattern.permute.xlu0 %v222_v0  ;;  %v206_v2 = vld [vmem:[%s298_s1 + $0x30] sm:$0xff]   ;;  %v207_v3 = vld [vmem:[%s298_s1 + $0x28] sm:$0xff]  }
   0x2   :  { %204 = vset.pattern.permute.xlu1 %v222_v0  ;;  %111 = vmatpush1.bf16.msra.mxu0 %v205_v1  ;;  %v21_v4 = vld [vmem:[%s299_s0] sm:$0xff]  ;;  %v209_v8 = vld [vmem:[%s298_s1 + $0x18] sm:$0xff]   ;;  %v210_v9 = vld [vmem:[%s298_s1 + $0x10] sm:$0xff]  }
   0x3   :  { %112 = vmatprep.subr.bf16.mxu0 %v222_v0  ;;  %v40_v5 = vld [vmem:[%s300_s2] sm:$0xff]  ;;  %v191_v7 = vcombine.high %v21_v4, %v21_v4  ;;  %v211_v10 = vld [vmem:[%s298_s1 + $0x8] sm:$0xff]   ;;  %v190_v13 = vcombine.low %v21_v4, %v21_v4 }
   0x4   :  { %v208_v6 = vld [vmem:[%s298_s1 + $0x20] sm:$0xff]   ;;  %43 = vperm.xlu0 %203, %v40_v5  }
   0x5   :  { %201 = vmatprep.mubr.msk.bf16.mxu0 %vm106_vm0, %v191_v7  ;;  %v212_v11 = vld [vmem:[%s298_s1] sm:$0xff]  }
   0x6   :  { %113 = vmatpush1.bf16.msra.mxu0 %v206_v2  ;;  %v213_v12 = vld [vmem:[%s298_s1 + $0x40] sm:$0xff]  }
   0x7   :  { %114 = vmatprep.subr.bf16.mxu0 %v222_v0  ;;  %v162_v29 = vld [vmem:[%s301_s3] sm:$0xff] }
   0x8   :  { %v172_v32 = vld [vmem:[%s302_s4] sm:$0xff] }
   0xa   :  { %115 = vmatpush1.bf16.msra.mxu0 %v207_v3 }
   0xb   :  { %116 = vmatprep.subr.bf16.mxu0 %v222_v0 }
   0xe   :  { %117 = vmatpush1.bf16.msra.mxu0 %v208_v6 }
   0xf   :  { %118 = vmatprep.subr.bf16.mxu0 %v222_v0 }
  0x12   :  { %119 = vmatpush1.bf16.msra.mxu0 %v209_v8 }
  0x13   :  { %120 = vmatprep.subr.bf16.mxu0 %v222_v0 }
  0x16   :  { %121 = vmatpush1.bf16.msra.mxu0 %v210_v9 }
  0x17   :  { %122 = vmatprep.subr.bf16.mxu0 %v222_v0 }
  0x1a   :  { %123 = vmatpush1.bf16.msra.mxu0 %v211_v10 }
  0x1b   :  { %124 = vmatprep.subr.bf16.mxu0 %v222_v0 }
  0x1e   :  { %125 = vmatpush1.bf16.msra.mxu0 %v212_v11 }
  0x1f   :  { %140 = vmatprep.subr.bf16.mxu0 %v222_v0 }
  0x22   :  { %141 = vmatpush2.bf16.msra.mxu0 %v213_v12 }
  0x25   :  { %143 = vmatmul.mubr.bf16.vlgmr.msra.gmra.mxu0 %v190_v13 }
  0x7f   :  { %v44_v14 = vpop.permute.xlu0 %43 }
  0xe5   :  { %v144_v15 = vpop.f32.mrf.mxu0 }
  0xe6   :  { %v145_v16 = vadd.f32 %v144_v15, %v44_v14 }
  0xe7   :  { %v146_v17 = vpop.f32.mrf.mxu0 }
  0xe8   :  { %v151_v18 = vsel %vm150_vm1, %v145_v16, 0.0 }
  0xe9   :  { %v147_v19 = vpop.f32.mrf.mxu0  ;;  %152 = vadd.xlane.f32.xlu0 %v151_v18 }
  0xeb   :  { %v148_v20 = vpop.f32.mrf.mxu0 }
 0x172   :  { %v153_v21 = vpop.xlane.xlu0 %152 }
 0x173   :  { %v155_v22 = vmul.f32 0.03125, %v153_v21 }
 0x175   :  { %v156_v23 = vsub.f32 %v145_v16, %v155_v22 }
 0x177   :  { %v157_v24 = vmul.f32 %v156_v23, %v156_v23 }
 0x179   :  { %v158_v25 = vsel %vm150_vm1, %v157_v24, 0.0 }
 0x17a   :  { %159 = vadd.xlane.f32.xlu1 %v158_v25 }
 0x203   :  { %v160_v26 = vpop.xlane.xlu1 %159 }
 0x204   :  { %v161_v27 = vmul.f32 0.03125, %v160_v26 }
 0x206   :  { %v163_v28 = vadd.f32 1e-05, %v161_v27 }
 0x208   :  { %216 = vrsqrt.f32 %v163_v28 }
 0x215   :  { %v217_v30 = vpop.eup %216 }
 0x216   :  { %v165_v31 = vmul.f32 %v217_v30, %v162_v29 }
 0x218   :  { %168 = vperm.xlu1 %204, %v165_v31  }
 0x21c   :  { %175 = vperm.xlu1 %204, %v172_v32  }
 0x293   :  { %v169_v33 = vpop.permute.xlu1 %168 }
 0x294   :  { %v171_v34 = vmul.f32 %v169_v33, %v156_v23 }
 0x297   :  { %v176_v35 = vpop.permute.xlu1 %175 }
 0x298   :  { %v178_v36 = vadd.f32 %v176_v35, %v171_v34 }
 0x29a   :  { %v179_v37 = vsub.f32 0.0, %v178_v36 }
 0x29c   :  { %v180_v38 = vmul.f32 1.442695, %v179_v37 }
 0x29e   :  { %218 = vpow2.f32 %v180_v38 }
 0x2ab   :  { %v219_v39 = vpop.eup %218 }
 0x2ac   :  { %v182_v40 = vadd.f32 1.0, %v219_v39 }
 0x2ae   :  { %220 = vrcp.f32 %v182_v40 }
 0x2bb   :  { %v221_v41 = vpop.eup %220 }
 0x2bc   :  { %185 = vst.msk [vmem:[%s303_s5] sm:$0xff] %vm150_vm1, %v221_v41 }

// kernel: u_net_forward.13
= control target key start
LH: loop header
LB: loop body
LE: loop exit
PB: predicated region body
PF: predicated region fallthrough
CT: control target
= control target key end

     0   :  { %vm68_vm0 = vcmask 1043456   ;;  %v191_v0 = vmov 0.0   ;;  %vm192_vm1 = vmmov 0   ;;  %v193_v3 = vmov 0   ;;  %s254_s1 = inlined_call_operand.vmem [shape: bf16[72,128], index: 1, kind: input, shape index: {}]   ;;  %s255_s2 = inlined_call_operand.vmem [shape: f32[8,1], index: 2, kind: input, shape index: {}]   ;;  %s256_s0 = inlined_call_operand.vmem [shape: bf16[8,72], index: 0, kind: input, shape index: {}]   ;;  %s257_s3 = inlined_call_operand.vmem [shape: f32[8,1], index: 3, kind: input, shape index: {}]   ;;  %s258_s4 = inlined_call_operand.vmem [shape: f32[8,1], index: 4, kind: input, shape index: {}]   ;;  %s259_s5 = inlined_call_operand.vmem [shape: f32[8,128], index: 5, kind: output, shape index: {}]  }
   0x1   :  { %161 = vmatprep.subr.bf16.mxu0 %v191_v0  ;;  %v180_v1 = vld [vmem:[%s254_s1 + $0x20] ss:$0 sps:$4 sm:$0xff]   ;;  %171 = vmatprep.mubr.msk.bf16.mxu0 %vm192_vm1, %v191_v0  ;;  %v181_v4 = vld [vmem:[%s254_s1 + $0x18] sm:$0xff]   ;;  %v182_v6 = vld [vmem:[%s254_s1 + $0x10] sm:$0xff]   ;;  %vm64_vm2 = vcmask 588800  }
   0x2   :  { %v70_v2 = vsel %vm68_vm0, %v180_v1, 0  ;;  %178 = vset.pattern.permute.xlu0 %v193_v3  ;;  %179 = vset.pattern.permute.xlu1 %v193_v3  ;;  %v31_v5 = vld [vmem:[%s255_s2] sm:$0xff]  ;;  %v183_v7 = vld [vmem:[%s254_s1 + $0x8] sm:$0xff]  }
   0x3   :  { %162 = vmatpush3.bf16.msra.mxu0 %v70_v2  ;;  %34 = vperm.xlu0 %178, %v31_v5   ;;  %v184_v8 = vld [vmem:[%s254_s1] sm:$0xff]  }
   0x4   :  { %163 = vmatprep.subr.bf16.mxu0 %v191_v0  ;;  %v21_v9 = vld [vmem:[%s256_s0] sm:$0xf] }
   0x5   :  { %v121_v23 = vld [vmem:[%s257_s3] sm:$0xff] }
   0x6   :  { %v131_v26 = vld [vmem:[%s258_s4] sm:$0xff] }
   0x7   :  { %164 = vmatpush3.bf16.msra.mxu0 %v181_v4 }
   0x8   :  { %165 = vmatprep.subr.bf16.mxu0 %v191_v0 }
   0xb   :  { %166 = vmatpush3.bf16.msra.mxu0 %v182_v6 }
   0xc   :  { %167 = vmatprep.subr.bf16.mxu0 %v191_v0 }
   0xf   :  { %168 = vmatpush3.bf16.msra.mxu0 %v183_v7 }
  0x10   :  { %169 = vmatprep.subr.bf16.mxu0 %v191_v0 }
  0x13   :  { %170 = vmatpush3.bf16.msra.mxu0 %v184_v8 }
  0x16   :  { %172 = vmatmul.mubr.msk.bf16.vlgmr.msra.gmra.mxu0 %vm64_vm2, %v21_v9 }
  0x7e   :  { %v35_v10 = vpop.permute.xlu0 %34 }
  0xd6   :  { %v106_v11 = vpop.f32.mrf.mxu0 }
  0xd7   :  { %v107_v12 = vadd.f32 %v106_v11, %v35_v10 }
  0xd8   :  { %v173_v13 = vpop.f32.mrf.mxu0 }
  0xd9   :  { %112 = vadd.xlane.f32.xlu0 %v107_v12 }
  0xda   :  { %v109_v14 = vpop.f32.mrf.mxu0 }
  0xdc   :  { %v174_v15 = vpop.f32.mrf.mxu0 }
 0x162   :  { %v113_v16 = vpop.xlane.xlu0 %112 }
 0x163   :  { %v115_v17 = vmul.f32 0.0078125, %v113_v16 }
 0x165   :  { %v116_v18 = vsub.f32 %v107_v12, %v115_v17 }
 0x167   :  { %v117_v19 = vmul.f32 %v116_v18, %v116_v18 }
 0x169   :  { %118 = vadd.xlane.f32.xlu1 %v117_v19 }
 0x1f2   :  { %v119_v20 = vpop.xlane.xlu1 %118 }
 0x1f3   :  { %v120_v21 = vmul.f32 0.0078125, %v119_v20 }
 0x1f5   :  { %v122_v22 = vadd.f32 1e-05, %v120_v21 }
 0x1f7   :  { %185 = vrsqrt.f32 %v122_v22 }
 0x204   :  { %v186_v24 = vpop.eup %185 }
 0x205   :  { %v124_v25 = vmul.f32 %v186_v24, %v121_v23 }
 0x207   :  { %127 = vperm.xlu1 %179, %v124_v25  }
 0x20b   :  { %134 = vperm.xlu1 %179, %v131_v26  }
 0x282   :  { %v128_v27 = vpop.permute.xlu1 %127 }
 0x283   :  { %v130_v28 = vmul.f32 %v128_v27, %v116_v18 }
 0x286   :  { %v135_v29 = vpop.permute.xlu1 %134 }
 0x287   :  { %v137_v30 = vadd.f32 %v135_v29, %v130_v28 }
 0x289   :  { %v138_v31 = vsub.f32 0.0, %v137_v30 }
 0x28b   :  { %v139_v32 = vmul.f32 1.442695, %v138_v31 }
 0x28d   :  { %187 = vpow2.f32 %v139_v32 }
 0x29a   :  { %v188_v33 = vpop.eup %187 }
 0x29b   :  { %v141_v34 = vadd.f32 1.0, %v188_v33 }
 0x29d   :  { %189 = vrcp.f32 %v141_v34 }
 0x2aa   :  { %v190_v35 = vpop.eup %189 }
 0x2ab   :  { %144 = vst [vmem:[%s259_s5] sm:$0xff] %v190_v35 }

// kernel: u_net_forward.14
= control target key start
LH: loop header
LB: loop body
LE: loop exit
PB: predicated region body
PF: predicated region fallthrough
CT: control target
= control target key end

     0   :  { %v219_v0 = vmov 0   ;;  %vm106_vm0 = vcmask 130048   ;;  %s292_s1 = inlined_call_operand.vmem [shape: bf16[144,128], index: 1, kind: input, shape index: {}]   ;;  %s293_s0 = inlined_call_operand.vmem [shape: bf16[8,144], index: 0, kind: input, shape index: {}]   ;;  %s294_s2 = inlined_call_operand.vmem [shape: f32[8,1], index: 2, kind: input, shape index: {}]   ;;  %s295_s3 = inlined_call_operand.vmem [shape: f32[8,1], index: 3, kind: input, shape index: {}]   ;;  %s296_s4 = inlined_call_operand.vmem [shape: f32[8,1], index: 4, kind: input, shape index: {}]   ;;  %s297_s5 = inlined_call_operand.vmem [shape: f32[8,128], index: 5, kind: output, shape index: {}]  }
   0x1   :  { %110 = vmatprep.subr.bf16.mxu0 %v219_v0  ;;  %v202_v1 = vld [vmem:[%s292_s1 + $0x38] sm:$0xff]   ;;  %200 = vset.pattern.permute.xlu0 %v219_v0  ;;  %v203_v2 = vld [vmem:[%s292_s1 + $0x30] sm:$0xff]   ;;  %v204_v3 = vld [vmem:[%s292_s1 + $0x28] sm:$0xff]  }
   0x2   :  { %201 = vset.pattern.permute.xlu1 %v219_v0  ;;  %111 = vmatpush1.bf16.msra.mxu0 %v202_v1  ;;  %v21_v4 = vld [vmem:[%s293_s0] sm:$0xff]  ;;  %v206_v8 = vld [vmem:[%s292_s1 + $0x18] sm:$0xff]   ;;  %v207_v9 = vld [vmem:[%s292_s1 + $0x10] sm:$0xff]  }
   0x3   :  { %112 = vmatprep.subr.bf16.mxu0 %v219_v0  ;;  %v40_v5 = vld [vmem:[%s294_s2] sm:$0xff]  ;;  %v188_v7 = vcombine.high %v21_v4, %v21_v4  ;;  %v208_v10 = vld [vmem:[%s292_s1 + $0x8] sm:$0xff]   ;;  %v187_v13 = vcombine.low %v21_v4, %v21_v4 }
   0x4   :  { %v205_v6 = vld [vmem:[%s292_s1 + $0x20] sm:$0xff]   ;;  %43 = vperm.xlu0 %200, %v40_v5  }
   0x5   :  { %198 = vmatprep.mubr.msk.bf16.mxu0 %vm106_vm0, %v188_v7  ;;  %v209_v11 = vld [vmem:[%s292_s1] sm:$0xff]  }
   0x6   :  { %113 = vmatpush1.bf16.msra.mxu0 %v203_v2  ;;  %v210_v12 = vld [vmem:[%s292_s1 + $0x40] sm:$0xff]  }
   0x7   :  { %114 = vmatprep.subr.bf16.mxu0 %v219_v0  ;;  %v159_v27 = vld [vmem:[%s295_s3] sm:$0xff] }
   0x8   :  { %v169_v30 = vld [vmem:[%s296_s4] sm:$0xff] }
   0xa   :  { %115 = vmatpush1.bf16.msra.mxu0 %v204_v3 }
   0xb   :  { %116 = vmatprep.subr.bf16.mxu0 %v219_v0 }
   0xe   :  { %117 = vmatpush1.bf16.msra.mxu0 %v205_v6 }
   0xf   :  { %118 = vmatprep.subr.bf16.mxu0 %v219_v0 }
  0x12   :  { %119 = vmatpush1.bf16.msra.mxu0 %v206_v8 }
  0x13   :  { %120 = vmatprep.subr.bf16.mxu0 %v219_v0 }
  0x16   :  { %121 = vmatpush1.bf16.msra.mxu0 %v207_v9 }
  0x17   :  { %122 = vmatprep.subr.bf16.mxu0 %v219_v0 }
  0x1a   :  { %123 = vmatpush1.bf16.msra.mxu0 %v208_v10 }
  0x1b   :  { %124 = vmatprep.subr.bf16.mxu0 %v219_v0 }
  0x1e   :  { %125 = vmatpush1.bf16.msra.mxu0 %v209_v11 }
  0x1f   :  { %140 = vmatprep.subr.bf16.mxu0 %v219_v0 }
  0x22   :  { %141 = vmatpush2.bf16.msra.mxu0 %v210_v12 }
  0x25   :  { %143 = vmatmul.mubr.bf16.vlgmr.msra.gmra.mxu0 %v187_v13 }
  0x7f   :  { %v44_v14 = vpop.permute.xlu0 %43 }
  0xe5   :  { %v144_v15 = vpop.f32.mrf.mxu0 }
  0xe6   :  { %v145_v16 = vadd.f32 %v144_v15, %v44_v14 }
  0xe7   :  { %v146_v17 = vpop.f32.mrf.mxu0 }
  0xe8   :  { %150 = vadd.xlane.f32.xlu0 %v145_v16 }
  0xe9   :  { %v147_v18 = vpop.f32.mrf.mxu0 }
  0xeb   :  { %v148_v19 = vpop.f32.mrf.mxu0 }
 0x171   :  { %v151_v20 = vpop.xlane.xlu0 %150 }
 0x172   :  { %v153_v21 = vmul.f32 0.0078125, %v151_v20 }
 0x174   :  { %v154_v22 = vsub.f32 %v145_v16, %v153_v21 }
 0x176   :  { %v155_v23 = vmul.f32 %v154_v22, %v154_v22 }
 0x178   :  { %156 = vadd.xlane.f32.xlu1 %v155_v23 }
 0x201   :  { %v157_v24 = vpop.xlane.xlu1 %156 }
 0x202   :  { %v158_v25 = vmul.f32 0.0078125, %v157_v24 }
 0x204   :  { %v160_v26 = vadd.f32 1e-05, %v158_v25 }
 0x206   :  { %213 = vrsqrt.f32 %v160_v26 }
 0x213   :  { %v214_v28 = vpop.eup %213 }
 0x214   :  { %v162_v29 = vmul.f32 %v214_v28, %v159_v27 }
 0x216   :  { %165 = vperm.xlu1 %201, %v162_v29  }
 0x21a   :  { %172 = vperm.xlu1 %201, %v169_v30  }
 0x291   :  { %v166_v31 = vpop.permute.xlu1 %165 }
 0x292   :  { %v168_v32 = vmul.f32 %v166_v31, %v154_v22 }
 0x295   :  { %v173_v33 = vpop.permute.xlu1 %172 }
 0x296   :  { %v175_v34 = vadd.f32 %v173_v33, %v168_v32 }
 0x298   :  { %v176_v35 = vsub.f32 0.0, %v175_v34 }
 0x29a   :  { %v177_v36 = vmul.f32 1.442695, %v176_v35 }
 0x29c   :  { %215 = vpow2.f32 %v177_v36 }
 0x2a9   :  { %v216_v37 = vpop.eup %215 }
 0x2aa   :  { %v179_v38 = vadd.f32 1.0, %v216_v37 }
 0x2ac   :  { %217 = vrcp.f32 %v179_v38 }
 0x2b9   :  { %v218_v39 = vpop.eup %217 }
 0x2ba   :  { %182 = vst [vmem:[%s297_s5] sm:$0xff] %v218_v39 }

// kernel: u_net_forward.15
= control target key start
LH: loop header
LB: loop body
LE: loop exit
PB: predicated region body
PF: predicated region fallthrough
CT: control target
= control target key end

     0   :  { %vm140_vm0 = vcmask 1043456   ;;  %v384_v2 = vmov 0   ;;  %vm136_vm1 = vcmask 588800   ;;  %s497_s1 = inlined_call_operand.vmem [shape: bf16[72,512], index: 1, kind: input, shape index: {}]   ;;  %s498_s2 = inlined_call_operand.vmem [shape: f32[8,1], index: 2, kind: input, shape index: {}]   ;;  %s499_s0 = inlined_call_operand.vmem [shape: bf16[8,72], index: 0, kind: input, shape index: {}]   ;;  %s500_s3 = inlined_call_operand.vmem [shape: f32[8,1], index: 3, kind: input, shape index: {}]   ;;  %s501_s4 = inlined_call_operand.vmem [shape: f32[8,1], index: 4, kind: input, shape index: {}]   ;;  %s502_s5 = inlined_call_operand.vmem [shape: f32[8,512], index: 5, kind: output, shape index: {}]  }
   0x1   :  { %v38_v0 = vld [vmem:[%s497_s1 + $0x80] sm:$0xff]  ;;  %v39_v1 = vld [vmem:[%s497_s1 + $0x88] sm:$0xff]  ;;  %185 = vmatprep.mubr.bf16.mxu0 %v384_v2  ;;  %226 = vmatprep.mubr.bf16.mxu1 %v384_v2 }
   0x2   :  { %v328_v3 = vcombine.high %v38_v0, %v38_v0  ;;  %v330_v4 = vcombine.high %v39_v1, %v39_v1  ;;  %v327_v5 = vcombine.low %v38_v0, %v38_v0  ;;  %v329_v6 = vcombine.low %v39_v1, %v39_v1  ;;  %v342_v7 = vld [vmem:[%s497_s1 + $0x64] ss:$16 sps:$4 sm:$0xff]   ;;  %336 = vset.pattern.permute.xlu0 %v384_v2  ;;  %v344_v8 = vld [vmem:[%s497_s1 + $0x6c] ss:$16 sps:$4 sm:$0xff]   ;;  %v346_v11 = vld [vmem:[%s497_s1 + $0x60] ss:$16 sps:$4 sm:$0xff]  }
   0x3   :  { %337 = vset.pattern.permute.xlu1 %v384_v2  ;;  %v347_v12 = vld [vmem:[%s497_s1 + $0x68] ss:$16 sps:$4 sm:$0xff]   ;;  %v348_v13 = vld [vmem:[%s497_s1 + $0x44] ss:$16 sps:$4 sm:$0xff]   ;;  %v350_v14 = vld [vmem:[%s497_s1 + $0x4c] ss:$16 sps:$4 sm:$0xff]  }
   0x4   :  { %331 = vmatprep.subr.msk.bf16.mxu0 %vm140_vm0, %v328_v3  ;;  %333 = vmatprep.subr.msk.bf16.mxu1 %vm140_vm0, %v330_v4  ;;  %v142_v9 = vsel %vm140_vm0, %v327_v5, 0  ;;  %v148_v10 = vsel %vm140_vm0, %v329_v6, 0  ;;  %v352_v15 = vld [vmem:[%s497_s1 + $0x40] ss:$16 sps:$4 sm:$0xff]   ;;  %v353_v16 = vld [vmem:[%s497_s1 + $0x48] ss:$16 sps:$4 sm:$0xff]  }
   0x5   :  { %160 = vmatpush1.bf16.msra.mxu0 %v142_v9  ;;  %201 = vmatpush1.bf16.msra.mxu1 %v148_v10  ;;  %v354_v17 = vld [vmem:[%s497_s1 + $0x24] ss:$16 sps:$4 sm:$0xff]   ;;  %v356_v18 = vld [vmem:[%s497_s1 + $0x2c] ss:$16 sps:$4 sm:$0xff]   ;;  %v358_v20 = vld [vmem:[%s497_s1 + $0x20] ss:$16 sps:$4 sm:$0xff]  }
   0x6   :  { %161 = vmatprep.subr.bf16.mxu0 %v342_v7  ;;  %202 = vmatprep.subr.bf16.mxu1 %v344_v8  ;;  %v40_v19 = vld [vmem:[%s498_s2] sm:$0xff]  ;;  %v359_v21 = vld [vmem:[%s497_s1 + $0x28] ss:$16 sps:$4 sm:$0xff]   ;;  %v362_v23 = vld [vmem:[%s497_s1 + $0xc] ss:$16 sps:$4 sm:$0xff]  }
   0x7   :  { %v360_v22 = vld [vmem:[%s497_s1 + $0x4] ss:$16 sps:$4 sm:$0xff]   ;;  %43 = vperm.xlu0 %336, %v40_v19   ;;  %v364_v24 = vld [vmem:[%s497_s1] ss:$16 sps:$4 sm:$0xff]   ;;  %v365_v25 = vld [vmem:[%s497_s1 + $0x8] ss:$16 sps:$4 sm:$0xff]  }
   0x8   :  { %v21_v26 = vld [vmem:[%s499_s0] sm:$0xf] }
   0x9   :  { %162 = vmatpush1.bf16.msra.mxu0 %v346_v11  ;;  %203 = vmatpush1.bf16.msra.mxu1 %v347_v12  ;;  %v256_v59 = vld [vmem:[%s500_s3] sm:$0xff] }
   0xa   :  { %163 = vmatprep.subr.bf16.mxu0 %v348_v13  ;;  %204 = vmatprep.subr.bf16.mxu1 %v350_v14  ;;  %v269_v62 = vld [vmem:[%s501_s4] sm:$0xff] }
   0xd   :  { %164 = vmatpush1.bf16.msra.mxu0 %v352_v15  ;;  %205 = vmatpush1.bf16.msra.mxu1 %v353_v16 }
   0xe   :  { %165 = vmatprep.subr.bf16.mxu0 %v354_v17  ;;  %206 = vmatprep.subr.bf16.mxu1 %v356_v18 }
  0x11   :  { %166 = vmatpush1.bf16.msra.mxu0 %v358_v20  ;;  %207 = vmatpush1.bf16.msra.mxu1 %v359_v21 }
  0x12   :  { %167 = vmatprep.subr.bf16.mxu0 %v360_v22  ;;  %208 = vmatprep.subr.bf16.mxu1 %v362_v23 }
  0x15   :  { %168 = vmatpush1.bf16.msra.mxu0 %v364_v24  ;;  %209 = vmatpush1.bf16.msra.mxu1 %v365_v25 }
  0x18   :  { %332 = vmatmul.mubr.msk.bf16.vlgmr.msra.gmra.mxu0 %vm136_vm1, %v21_v26  ;;  %334 = vmatmul.mubr.msk.bf16.vlgmr.msra.gmra.mxu1 %vm136_vm1, %v21_v26 }
  0x82   :  { %v44_v27 = vpop.permute.xlu0 %43 }
  0xd8   :  { %v187_v28 = vpop.f32.mrf.mxu0  ;;  %v228_v29 = vpop.f32.mrf.mxu1 }
  0xd9   :  { %v188_v32 = vadd.f32 %v187_v28, %v44_v27  ;;  %v229_v36 = vadd.f32 %v228_v29, %v44_v27 }
  0xda   :  { %v189_v30 = vpop.f32.mrf.mxu0  ;;  %v230_v31 = vpop.f32.mrf.mxu1 }
  0xdb   :  { %v190_v33 = vadd.f32 %v189_v30, %v44_v27  ;;  %v231_v40 = vadd.f32 %v230_v31, %v44_v27 }
  0xdc   :  { %v191_v34 = vpop.f32.mrf.mxu0  ;;  %v232_v35 = vpop.f32.mrf.mxu1 }
  0xdd   :  { %v235_v37 = vadd.f32 %v190_v33, %v188_v32 }
  0xde   :  { %v192_v38 = vpop.f32.mrf.mxu0  ;;  %v233_v39 = vpop.f32.mrf.mxu1 }
  0xdf   :  { %v236_v41 = vadd.f32 %v235_v37, %v229_v36 }
  0xe1   :  { %v237_v42 = vadd.f32 %v236_v41, %v231_v40 }
  0xe3   :  { %238 = vadd.xlane.f32.xlu0 %v237_v42 }
 0x16c   :  { %v239_v43 = vpop.xlane.xlu0 %238 }
 0x16d   :  { %v241_v44 = vmul.f32 0.001953125, %v239_v43 }
 0x16f   :  { %v242_v45 = vsub.f32 %v188_v32, %v241_v44  ;;  %v243_v46 = vsub.f32 %v190_v33, %v241_v44  ;;  %v244_v47 = vsub.f32 %v229_v36, %v241_v44  ;;  %v245_v48 = vsub.f32 %v231_v40, %v241_v44 }
 0x171   :  { %v246_v49 = vmul.f32 %v242_v45, %v242_v45  ;;  %v247_v50 = vmul.f32 %v243_v46, %v243_v46  ;;  %v248_v51 = vmul.f32 %v244_v47, %v244_v47  ;;  %v249_v53 = vmul.f32 %v245_v48, %v245_v48 }
 0x173   :  { %v250_v52 = vadd.f32 %v247_v50, %v246_v49 }
 0x175   :  { %v251_v54 = vadd.f32 %v250_v52, %v248_v51 }
 0x177   :  { %v252_v55 = vadd.f32 %v251_v54, %v249_v53 }
 0x179   :  { %253 = vadd.xlane.f32.xlu1 %v252_v55 }
 0x202   :  { %v254_v56 = vpop.xlane.xlu1 %253 }
 0x203   :  { %v255_v57 = vmul.f32 0.001953125, %v254_v56 }
 0x205   :  { %v257_v58 = vadd.f32 1e-05, %v255_v57 }
 0x207   :  { %366 = vrsqrt.f32 %v257_v58 }
 0x214   :  { %v367_v60 = vpop.eup %366 }
 0x215   :  { %v259_v61 = vmul.f32 %v367_v60, %v256_v59 }
 0x217   :  { %262 = vperm.xlu1 %337, %v259_v61  }
 0x21b   :  { %272 = vperm.xlu1 %337, %v269_v62  }
 0x292   :  { %v263_v63 = vpop.permute.xlu1 %262 }
 0x293   :  { %v265_v0 = vmul.f32 %v263_v63, %v242_v45  ;;  %v266_v1 = vmul.f32 %v263_v63, %v243_v46  ;;  %v267_v2 = vmul.f32 %v263_v63, %v244_v47  ;;  %v268_v3 = vmul.f32 %v263_v63, %v245_v48 }
 0x296   :  { %v273_v4 = vpop.permute.xlu1 %272 }
 0x297   :  { %v275_v5 = vadd.f32 %v273_v4, %v265_v0  ;;  %v276_v6 = vadd.f32 %v273_v4, %v266_v1  ;;  %v277_v7 = vadd.f32 %v273_v4, %v267_v2  ;;  %v278_v8 = vadd.f32 %v273_v4, %v268_v3 }
 0x299   :  { %v279_v9 = vsub.f32 0.0, %v275_v5  ;;  %v280_v10 = vsub.f32 0.0, %v276_v6  ;;  %v281_v11 = vsub.f32 0.0, %v277_v7  ;;  %v282_v12 = vsub.f32 0.0, %v278_v8 }
 0x29b   :  { %v283_v13 = vmul.f32 1.442695, %v279_v9  ;;  %v285_v14 = vmul.f32 1.442695, %v280_v10  ;;  %v287_v15 = vmul.f32 1.442695, %v281_v11 }
 0x29c   :  { %v289_v16 = vmul.f32 1.442695, %v282_v12 }
 0x29d   :  { %368 = vpow2.f32 %v283_v13 }
 0x29e   :  { %370 = vpow2.f32 %v285_v14 }
 0x29f   :  { %372 = vpow2.f32 %v287_v15 }
 0x2a0   :  { %374 = vpow2.f32 %v289_v16 }
 0x2aa   :  { %v369_v17 = vpop.eup %368 }
 0x2ab   :  { %v371_v18 = vpop.eup %370  ;;  %v291_v19 = vadd.f32 1.0, %v369_v17 }
 0x2ac   :  { %v373_v20 = vpop.eup %372  ;;  %v292_v21 = vadd.f32 1.0, %v371_v18 }
 0x2ad   :  { %v375_v22 = vpop.eup %374  ;;  %v293_v23 = vadd.f32 1.0, %v373_v20  ;;  %376 = vrcp.f32 %v291_v19 }
 0x2ae   :  { %v294_v24 = vadd.f32 1.0, %v375_v22  ;;  %378 = vrcp.f32 %v292_v21 }
 0x2af   :  { %380 = vrcp.f32 %v293_v23 }
 0x2b0   :  { %382 = vrcp.f32 %v294_v24 }
 0x2ba   :  { %v377_v25 = vpop.eup %376 }
 0x2bb   :  { %v379_v26 = vpop.eup %378  ;;  %303 = vst [vmem:[%s502_s5] sm:$0xff] %v377_v25 }
 0x2bc   :  { %v381_v27 = vpop.eup %380  ;;  %304 = vst [vmem:[%s502_s5 + $0x8] sm:$0xff] %v379_v26 }
 0x2bd   :  { %v383_v28 = vpop.eup %382  ;;  %305 = vst [vmem:[%s502_s5 + $0x10] sm:$0xff] %v381_v27 }
 0x2be   :  { %306 = vst [vmem:[%s502_s5 + $0x18] sm:$0xff] %v383_v28 }

</bundles_post_ra>
